<compile_context>
chip_gen: v6e
topology: v6e:2x2x1
jax: 0.10.0
libtpu: 0.0.40
codegen_flags: <defaults>
</compile_context>

<pallas_src>
import jax
import jax.numpy as jnp
from jax.experimental import pallas as pl
from jax.experimental.pallas import tpu as pltpu


def _model_kernel(x1_ref, inp_k_ref, inp_e_ref, x2_ref, out_ref):
    """Tiled (i, j, k) matmul + folded epilogue.

    x1_ref    : (tm, tk)  tile of x1  at (i, k)   -> matmul LHS
    inp_k_ref : (tk, tn)  tile of inp at (k, j)   -> matmul RHS
    inp_e_ref : (tm, tn)  tile of inp at (i, j)   -> elementwise term
    x2_ref    : (1,  tn)  slice of x2 at column-tile j
    out_ref   : (tm, tn)  output tile at (i, j); f32, resident across k,
                          doubles as the accumulator (no scratch needed).
    """
    k = pl.program_id(2)

    @pl.when(k == 0)
    def _():
        out_ref[...] = jnp.zeros_like(out_ref)

    # v2 partial: accumulate x1[i, k] @ inp[k, j] on the MXU in f32.
    out_ref[...] += jnp.dot(
        x1_ref[...], inp_k_ref[...], preferred_element_type=jnp.float32
    )

    @pl.when(k == pl.num_programs(2) - 1)
    def _():
        # Folded epilogue: out = (2*inp + x2 + 1) * v2
        scale = 2.0 * inp_e_ref[...] + (x2_ref[...] + 1.0)
        out_ref[...] = scale * out_ref[...]


def model_forward(x1, x2, inp, *, tm=256, tn=256, tk=512):
    """x1: (M, K) f32, x2: (N,) f32, inp: (K, N) f32 with M == K."""
    M, K = x1.shape
    K2, N = inp.shape
    assert K == K2 and M == K, "broadcast in (v1+inp)*v2 requires M == K"

    # Clamp tiles to the problem (small shapes collapse to a 1x1x1 grid,
    # i.e. a single-invocation kernel — everything resident in VMEM).
    tm, tn, tk = min(tm, M), min(tn, N), min(tk, K)
    assert M % tm == 0 and N % tn == 0 and K % tk == 0, "tiles must divide shapes"

    x2_2d = x2.reshape(1, N)

    cost = pl.CostEstimate(
        flops=2 * M * N * K,
        transcendentals=0,
        # x1 + inp (matmul RHS) + inp (elementwise) + x2 + out, all f32.
        bytes_accessed=4 * (M * K + K * N + M * N + N + M * N),
    )

    return pl.pallas_call(
        _model_kernel,
        out_shape=jax.ShapeDtypeStruct((M, N), jnp.float32),
        grid=(M // tm, N // tn, K // tk),
        in_specs=[
            # matmul LHS: x1 tile (i, k)
            pl.BlockSpec((tm, tk), lambda i, j, k: (i, k)),
            # matmul RHS: inp tile (k, j)
            pl.BlockSpec((tk, tn), lambda i, j, k: (k, j)),
            # elementwise term: inp tile indexed by the OUTPUT coords (i, j)
            pl.BlockSpec((tm, tn), lambda i, j, k: (i, j)),
            # bias row slice: only the tn-wide chunk for column-tile j
            pl.BlockSpec((1, tn), lambda i, j, k: (0, j)),
        ],
        out_specs=pl.BlockSpec((tm, tn), lambda i, j, k: (i, j)),
        compiler_params=pltpu.CompilerParams(
            # i, j independent (megacore-shardable); k is the reduction.
            dimension_semantics=("parallel", "parallel", "arbitrary"),
            # ~3 MiB of double-buffered windows at 256/512 tiles; 32 MiB is a
            # safe explicit cap on v5e/v6e/v7x and raises v5e's 16 MiB default.
            vmem_limit_bytes=32 * 1024 * 1024,
        ),
        cost_estimate=cost,
    )(x1, inp, inp, x2_2d)


if __name__ == "__main__":
    key = jax.random.PRNGKey(0)
    k1, k2, k3 = jax.random.split(key, 3)

    # Small but tile-exercising shapes: grid = (2, 2, 1) with 256/512 tiles,
    # so both v7x TensorCores get work; ~1 MiB per matrix.
    M = K = N = 512
    x1 = jax.random.normal(k1, (M, K), dtype=jnp.float32)
    inp = jax.random.normal(k2, (K, N), dtype=jnp.float32)
    x2 = jax.random.normal(k3, (N,), dtype=jnp.float32)

    out = model_forward(x1, x2, inp)
    out = jax.block_until_ready(out)

    # Pure-JAX reference check (original un-folded formula).
    v1 = inp + x2
    v2 = jnp.dot(x1, inp, preferred_element_type=jnp.float32)
    ref = (v1 + inp) * v2 + v2
    assert jnp.allclose(out, ref, atol=1e-2, rtol=1e-3), "mismatch vs reference"

    print("KERNEL_OK")
</pallas_src>

<mosaic_0001>
module attributes {stable_mosaic.version = 11 : i64} {
  func.func @_model_kernel(%arg0: i32, %arg1: i32, %arg2: i32, %arg3: memref<256x512xf32, #tpu.memory_space<vmem>>, %arg4: memref<512x256xf32, #tpu.memory_space<vmem>>, %arg5: memref<256x256xf32, #tpu.memory_space<vmem>>, %arg6: memref<1x256xf32, #tpu.memory_space<vmem>>, %arg7: memref<256x256xf32, #tpu.memory_space<vmem>>) attributes {dimension_semantics = [#tpu.dimension_semantics<parallel>, #tpu.dimension_semantics<parallel>, #tpu.dimension_semantics<arbitrary>], iteration_bounds = array<i64: 2, 2, 1>, scalar_prefetch = 0 : i64, scratch_operands = 0 : i64, tpu.core_type = #tpu.core_type<tc>, window_params = [{transform_indices = @transform_0, window_bounds = array<i64: 256, 512>}, {transform_indices = @transform_1, window_bounds = array<i64: 512, 256>}, {transform_indices = @transform_2, window_bounds = array<i64: 256, 256>}, {transform_indices = @transform_3, window_bounds = array<i64: 1, 256>}, {transform_indices = @transform_4, window_bounds = array<i64: 256, 256>}]} {
    %c0_i32 = arith.constant 0 : i32
    %0 = arith.cmpi eq, %arg2, %c0_i32 : i32
    %1 = arith.extui %0 : i1 to i32
    %c0_i32_0 = arith.constant 0 : i32
    %2 = arith.cmpi ne, %1, %c0_i32_0 : i32
    scf.if %2 {
      %cst_10 = arith.constant 0.000000e+00 : f32
      %12 = vector.broadcast %cst_10 : f32 to vector<256x256xf32>
      %c0_11 = arith.constant 0 : index
      %c0_12 = arith.constant 0 : index
      %13 = vector.load %arg7[%c0_11, %c0_12] : memref<256x256xf32, #tpu.memory_space<vmem>>, vector<256x256xf32>
      tpu.vector_store %arg7[%c0_11, %c0_12], %12 {strides = array<i32>} : memref<256x256xf32, #tpu.memory_space<vmem>>, vector<256x256xf32>,
    } else {
    }
    %c0 = arith.constant 0 : index
    %c0_1 = arith.constant 0 : index
    %3 = vector.load %arg7[%c0, %c0_1] : memref<256x256xf32, #tpu.memory_space<vmem>>, vector<256x256xf32>
    %c0_2 = arith.constant 0 : index
    %c0_3 = arith.constant 0 : index
    %4 = vector.load %arg3[%c0_2, %c0_3] : memref<256x512xf32, #tpu.memory_space<vmem>>, vector<256x512xf32>
    %c0_4 = arith.constant 0 : index
    %c0_5 = arith.constant 0 : index
    %5 = vector.load %arg4[%c0_4, %c0_5] : memref<512x256xf32, #tpu.memory_space<vmem>>, vector<512x256xf32>
    %cst = arith.constant dense<0.000000e+00> : vector<256x256xf32>
    %6 = tpu.matmul %4, %5, %cst {dimension_numbers = #tpu.dot_dimension_numbers<[1], [0], [0], [1], [0, 0, 1, 1], [], []>} : vector<256x512xf32>, vector<512x256xf32>, vector<256x256xf32> -> vector<256x256xf32>
    %7 = arith.addf %3, %6 : vector<256x256xf32>
    %c0_6 = arith.constant 0 : index
    %c0_7 = arith.constant 0 : index
    %8 = vector.load %arg7[%c0_6, %c0_7] : memref<256x256xf32, #tpu.memory_space<vmem>>, vector<256x256xf32>
    tpu.vector_store %arg7[%c0_6, %c0_7], %7 {strides = array<i32>} : memref<256x256xf32, #tpu.memory_space<vmem>>, vector<256x256xf32>,
    %c0_i32_8 = arith.constant 0 : i32
    %9 = arith.cmpi eq, %arg2, %c0_i32_8 : i32
    %10 = arith.extui %9 : i1 to i32
    %c0_i32_9 = arith.constant 0 : i32
    %11 = arith.cmpi ne, %10, %c0_i32_9 : i32
    scf.if %11 {
      %c0_10 = arith.constant 0 : index
      %c0_11 = arith.constant 0 : index
      %12 = vector.load %arg5[%c0_10, %c0_11] : memref<256x256xf32, #tpu.memory_space<vmem>>, vector<256x256xf32>
      %cst_12 = arith.constant 2.000000e+00 : f32
      %13 = vector.broadcast %cst_12 : f32 to vector<256x256xf32>
      %14 = arith.mulf %13, %12 : vector<256x256xf32>
      %c0_13 = arith.constant 0 : index
      %c0_14 = arith.constant 0 : index
      %15 = vector.load %arg6[%c0_13, %c0_14] : memref<1x256xf32, #tpu.memory_space<vmem>>, vector<1x256xf32>
      %cst_15 = arith.constant 1.000000e+00 : f32
      %16 = vector.broadcast %cst_15 : f32 to vector<1x256xf32>
      %17 = arith.addf %15, %16 : vector<1x256xf32>
      %18 = vector.broadcast %17 : vector<1x256xf32> to vector<256x256xf32>
      %19 = arith.addf %14, %18 : vector<256x256xf32>
      %c0_16 = arith.constant 0 : index
      %c0_17 = arith.constant 0 : index
      %20 = vector.load %arg7[%c0_16, %c0_17] : memref<256x256xf32, #tpu.memory_space<vmem>>, vector<256x256xf32>
      %21 = arith.mulf %19, %20 : vector<256x256xf32>
      %c0_18 = arith.constant 0 : index
      %c0_19 = arith.constant 0 : index
      %22 = vector.load %arg7[%c0_18, %c0_19] : memref<256x256xf32, #tpu.memory_space<vmem>>, vector<256x256xf32>
      tpu.vector_store %arg7[%c0_18, %c0_19], %21 {strides = array<i32>} : memref<256x256xf32, #tpu.memory_space<vmem>>, vector<256x256xf32>,
    } else {
    }
    return
  }
  func.func @transform_0(%arg0: i32, %arg1: i32, %arg2: i32) -> (i32, i32) {
    %c0_i32 = arith.constant 0 : i32
    return %arg0, %arg2 : i32, i32
  }
  func.func @transform_1(%arg0: i32, %arg1: i32, %arg2: i32) -> (i32, i32) {
    %c0_i32 = arith.constant 0 : i32
    return %arg2, %arg1 : i32, i32
  }
  func.func @transform_2(%arg0: i32, %arg1: i32, %arg2: i32) -> (i32, i32) {
    %c0_i32 = arith.constant 0 : i32
    return %arg0, %arg1 : i32, i32
  }
  func.func @transform_3(%arg0: i32, %arg1: i32, %arg2: i32) -> (i32, i32) {
    %c0_i32 = arith.constant 0 : i32
    %c0_i32_0 = arith.constant 0 : i32
    return %c0_i32, %arg1 : i32, i32
  }
  func.func @transform_4(%arg0: i32, %arg1: i32, %arg2: i32) -> (i32, i32) {
    %c0_i32 = arith.constant 0 : i32
    return %arg0, %arg1 : i32, i32
  }
}

</mosaic_0001>

<bundles_post_ra>
// kernel: tpu_custom_call.1
= control target key start
LH: loop header
LB: loop body
LE: loop exit
PB: predicated region body
PF: predicated region fallthrough
CT: control target
= control target key end

     0   :  { %s3222_s0 = inlined_call_operand.hbm [shape: f32[512,512], index: 0, kind: input, shape index: {}]   ;;  %s3223_s1 = inlined_call_operand.hbm [shape: f32[512,512], index: 1, kind: input, shape index: {}]   ;;  %s3224_s2 = inlined_call_operand.hbm [shape: f32[512,512], index: 2, kind: input, shape index: {}]   ;;  %s3225_s3 = inlined_call_operand.vmem [shape: f32[1,512], index: 3, kind: input, shape index: {}]   ;;  %s3226_s4 = inlined_call_operand.hbm [shape: f32[512,512], index: 4, kind: output, shape index: {}]  }
   0x1   :  { %3242 = sst [smem:[#allocation22_spill]] %s3222_s0 }
   0x2   :  { %3243 = sst [smem:[#allocation23_spill]] %s3223_s1 }
   0x3   :  { %3244 = sst [smem:[#allocation24_spill]] %s3225_s3 }
   0x4   :  { %3245 = sst [smem:[#allocation25_spill]] %s3226_s4 }
   0x5   :  { %9 = vsyncpa [#allocation3], 0 }
   0x6   :  { %11 = vsyncpa [#allocation3 + $0x1], 0 }
   0x7   :  { %12 = vsyncpa [#allocation6], 0 }
   0x8   :  { %14 = vsyncpa [#allocation6 + $0x1], 0 }
   0x9   :  { %15 = vsyncpa [#allocation4], 0 }
   0xa   :  { %17 = vsyncpa [#allocation4 + $0x1], 0  ;;  %s2406_s15 = smov 0   ;;  %s2408_s16 = smov 0  }
   0xb   :  { %s2410_s17 = smov 0   ;;  %s2412_s18 = smov 0  }
   0xc   :  { %s2414_s19 = smov 0   ;;  %s2416_s20 = smov 0  }
   0xd   :  { %s2418_s21 = smov 0   ;;  %s2420_s22 = smov 0  }
   0xe   :  { %s2422_s23 = smov 0   ;;  %s2424_s24 = smov 0  }
   0xf   :  { %s2426_s25 = smov 0   ;;  %s2428_s26 = smov 0  }
  0x10   :  { %s2430_s27 = smov 0   ;;  %s2432_s28 = smov 0  }
  0x11 LB: > { %3246 = sst [smem:[#allocation13_spill]] %s2336_s20  ;;  %s2475_s29 = sadd.s32 4294967295, %s2368_s28   ;;  %s2368_s28 = sphi %s2432_s28, %s23_s28   ;;  %s2364_s27 = sphi %s2430_s27, %s3300_s27   ;;  %s2360_s26 = sphi %s2428_s26, %s3299_s26   ;;  %s2356_s25 = sphi %s2426_s25, %s3298_s25   ;;  %s2352_s24 = sphi %s2424_s24, %s3297_s24   ;;  %s2348_s23 = sphi %s2422_s23, %s3287_s23   ;;  %s2344_s22 = sphi %s2420_s22, %s3296_s22   ;;  %s2340_s21 = sphi %s2418_s21, %s3295_s21   ;;  %s2336_s20 = sphi %s2416_s20, %s3285_s20   ;;  %s2332_s19 = sphi %s2414_s19, %s3294_s19   ;;  %s2328_s18 = sphi %s2412_s18, %s3293_s18   ;;  %s2324_s17 = sphi %s2410_s17, %s3292_s17   ;;  %s2320_s16 = sphi %s2408_s16, %s3291_s16   ;;  %s2316_s15 = sphi %s2406_s15, %s3290_s15  }
  0x12   : > { %3247 = sst [smem:[#allocation14_spill]] %s2348_s23  ;;  %s38_s30 = sadd.s32 1, %s2360_s26 }
  0x13   : > { %3248 = sst [smem:[#allocation15_spill]] %s2352_s24  ;;  %p2478_p0 = scmp.ge.s32.totalorder %s38_s30, 2 }
  0x14   : > { %3249 = sst [smem:[#allocation16_spill]] %s2356_s25  ;;  %p3238_p1 = scmp.eq.s32.totalorder %s2368_s28, 0 }
  0x15   : > { %p3237_p2 = scmp.eq.s32.totalorder %s2475_s29, 0  ;;  %s79_s6 = sadd.s32 1, %s2336_s20 }
  0x16   : > { %s3302_s30 = smov (%p2478_p0, %s38_s30), 0  ;;  %p86_p3 = scmp.ne.s32.totalorder %s2336_s20, %s2332_s19 }
  0x17   : > { %3251 = sst [smem:[#allocation17_spill]] %s3302_s30  ;;  %p92_p4 = scmp.ne.s32.totalorder %s2332_s19, %s2328_s18 }
  0x18   : > { %s2494_s7 = ssub.s32 %s2360_s26, %s3302_s30  ;;  %p88_p6 = por %p86_p3, %p3238_p1 }
  0x19   : > { %p77_p5 = scmp.eq.s32.totalorder %s2494_s7, 0  ;;  %p2501_p7 = por %p92_p4, %p3237_p2 }
  0x1a   : > { %p2010_p8 = scmp.lt.s32.totalorder %s2368_s28, 4  ;;  %s222_s10 = sand.u32 1, %s2368_s28  }
  0x1b   : > { %s3252_s8 = scalar_select %p2501_p7, 1, 0 }
  0x1c   : > { %s2507_s9 = scalar_select %p77_p5, %s2336_s20, %s79_s6  }
  0x1d   : > { %3253 = sst [smem:[#allocation18_spill]] %s3252_s8  ;;  %s224_s11 = sand.u32 1, %s2336_s20  }
  0x1e   : > { %3254 = sst [smem:[#allocation19_spill]] %s2507_s9  ;;  %s1962_s12 = sshll.u32 %s224_s11, 10 }
  0x1f   : > { %s1985_s13 = sshll.u32 %s2360_s26, 8  ;;  %s3255_s1 = sld [smem:[#allocation23_spill]] }
  0x20   : > { %s226_s4 = scalar_lea.vmem [#allocation5], %s1962_s12  ;;  %p2517_p9 = pnand %p2010_p8, %p88_p6 }
  0x21   : > { %s236_s25 = sshll.u32 %s226_s4, 4  ;;  %s2521_s24 = scalar_lea.sflag [#allocation6], %s222_s10  ;;  %s237_s25 = int_to_ptr.vmem [resolvable:$true] %s236_s25 }
  0x22   : > { %p2134_p10 = pneg %p2517_p9  ;;  %s2145_s6 = scalar_lea.vmem %s237_s25, 16384 }
  0x23   : > { %p2146_p11 = scmp.ne.s32.totalorder %s237_s25, %s2145_s6  ;;  %s2370_s11 = smov [#allocation5]  }
  0x24   : > { %s2150_s14 = sshll.u32 %s2370_s11, 4  ;;  %s2151_s14 = int_to_ptr.vmem [resolvable:$false] %s2150_s14 }
  0x25   : > { %s235_s30 = scalar_lea.hbm %s3255_s1, %s1985_s13  ;;  %p2148_p12 = pnand %p2146_p11, %p2134_p10 }
  0x26   : > { %s2152_s12 = scalar_lea.vmem %s2151_s14, 32768  ;;  %p2153_p3 = scmp.lt.s32.totalorder %s237_s25, %s2151_s14 }
  0x27   : > { %p2149_p13 = pneg %p2148_p12  ;;  %p2154_p4 = scmp.lt.s32.totalorder %s2152_s12, %s2145_s6 }
  0x29   : > { %p2155_p5 = por %p2154_p4, %p2153_p3 }
  0x2b   : > { %p2156_p6 = pnand %p2155_p5, %p2149_p13 }
  0x2d   : > { %2159 = shalt.err (!%p2156_p6)
}
  0x2e   : > { %s3231_s4 = smov 512   ;;  %s3229_s10 = smov 256  }
  0x2f   : > { %s3230_s13 = smov 16   ;;  %p1970_p10 = scmp.ge.s32.totalorder %s2368_s28, 1 }
  0x30   : > { %2002 = dma.hbm_to_vmem [thread:$0]  (!%p2517_p9), %s235_s30, 16384, %s237_s25, %s2521_s24, %s3231_s4, %s3229_s10, %s3230_s13  }
  0x31   : > { %p276_p11 = scmp.lt.s32.totalorder %s2368_s28, 5  ;;  %s42_s6 = sadd.s32 1, %s2364_s27 }
  0x32   : > { %s3304_s6 = smov (!%p2478_p0, %s42_s6), %s2364_s27  ;;  %s51_s11 = sadd.s32 1, %s2348_s23 }
  0x33   : > { %p2533_p12 = pnand %p1970_p10, %p276_p11  ;;  %p58_p13 = scmp.ne.s32.totalorder %s2348_s23, %s2344_s22 }
  0x34   : > { %p44_p3 = scmp.ge.s32.totalorder %s3304_s6, 2  ;;  %p64_p4 = scmp.ne.s32.totalorder %s2344_s22, %s2340_s21 }
  0x35   : > { %p2548_p5 = por %p3238_p1, %p58_p13  ;;  %s198_s25 = sand.u32 1, %s2348_s23  }
  0x36   : > { %s3306_s6 = smov (%p44_p3, %s3304_s6), 0  ;;  %p2557_p9 = por %p3237_p2, %p64_p4 }
  0x37   : > { %3259 = sst [smem:[#allocation20_spill]] %s3306_s6  ;;  %s46_s5 = ssub.s32 %s2364_s27, %s3306_s6 }
  0x38   : > { %s1958_s14 = sshll.u32 %s198_s25, 10  ;;  %p49_p0 = scmp.eq.s32.totalorder %s46_s5, 0 }
  0x39   : > { %s104_s21 = sor.u32 %s2494_s7, %s46_s5  ;;  %s1984_s13 = sshll.u32 %s2364_s27, 14 }
  0x3a   : > { %p2564_p6 = scmp.eq.s32.totalorder %s104_s21, 0  ;;  %s202_s4 = scalar_lea.vmem [#allocation2], %s1958_s14 }
  0x3b   : > { %s2569_s10 = scalar_select %p49_p0, %s2348_s23, %s51_s11  }
  0x3c   : > { %s212_s1 = sshll.u32 %s202_s4, 4  ;;  %s3263_s0 = sld [smem:[#allocation22_spill]]  ;;  %s213_s1 = int_to_ptr.vmem [resolvable:$true] %s212_s1 }
  0x3d   : > { %3262 = sst [smem:[#allocation21_spill]] %s2569_s10  ;;  %p2579_p10 = pnand %p2010_p8, %p2548_p5 }
  0x3e   : > { %s199_s7 = scalar_lea.sflag [#allocation3], %s198_s25  ;;  %s2173_s11 = scalar_lea.vmem %s213_s1, 16384 }
  0x3f   : > { %p2162_p11 = pneg %p2579_p10  ;;  %p2174_p13 = scmp.ne.s32.totalorder %s213_s1, %s2173_s11 }
  0x40   : > { %s2374_s4 = smov [#allocation2]  }
  0x41   : > { %p2176_p3 = pnand %p2174_p13, %p2162_p11  ;;  %s2178_s5 = sshll.u32 %s2374_s4, 4  ;;  %s2179_s5 = int_to_ptr.vmem [resolvable:$false] %s2178_s5 }
  0x42   : > { %s211_s8 = scalar_lea.hbm %s3263_s0, %s1984_s13  ;;  %s2180_s20 = scalar_lea.vmem %s2179_s5, 32768 }
  0x43   : > { %p2177_p4 = pneg %p2176_p3  ;;  %p2181_p0 = scmp.lt.s32.totalorder %s213_s1, %s2179_s5 }
  0x44   : > { %p2182_p2 = scmp.lt.s32.totalorder %s2180_s20, %s2173_s11 }
  0x46   : > { %p2183_p1 = por %p2182_p2, %p2181_p0 }
  0x48   : > { %p2184_p7 = pnand %p2183_p1, %p2177_p4 }
  0x4a   : > { %2187 = shalt.err (!%p2184_p7)
}
  0x4b   : > { %s2375_s9 = smov 32   ;;  %s3265_s13 = smov 512  }
  0x4c   : > { %1999 = dma.hbm_to_vmem [thread:$0]  (!%p2579_p10), %s211_s8, 16384, %s213_s1, %s199_s7, %s3265_s13, %s3265_s13, %s2375_s9  }
  0x4d   : > { %s1955_s3 = sadd.s32 4294967294, %s2368_s28   ;;  %s107_s25 = sadd.s32 1, %s2324_s17 }
  0x4e   : > { %p114_p1 = scmp.ne.s32.totalorder %s2324_s17, %s2320_s16  ;;  %p3266_p2 = scmp.eq.s32.totalorder %s2368_s28, 0 }
  0x4f   : > { %s2596_s6 = scalar_select %p2564_p6, %s2324_s17, %s107_s25  }
  0x50   : > { %p2600_p7 = por %p114_p1, %p3266_p2  ;;  %p120_p5 = scmp.ne.s32.totalorder %s2320_s16, %s2316_s15 }
  0x51   : > { %p172_p11 = scmp.eq.s32.totalorder %s2475_s29, 3  ;;  %p178_p13 = scmp.eq.s32.totalorder %s1955_s3, 3 }
  0x52   : > { %p3268_p3 = scmp.eq.s32.totalorder %s2475_s29, 0  ;;  %s248_s1 = sand.u32 1, %s2324_s17  }
  0x53   : > { %p2614_p10 = por %p172_p11, %p114_p1  ;;  %p2618_p6 = por %p178_p13, %p120_p5 }
  0x54   : > { %p2609_p4 = por %p120_p5, %p3268_p3  ;;  %s1965_s7 = sshll.u32 %s248_s1, 9 }
  0x55   : > { %s3270_s8 = scalar_select %p2614_p10, 1, 0 }
  0x56   : > { %s3271_s12 = scalar_select %p2618_p6, 1, 0 }
  0x57   : > { %s1967_s11 = sshll.u32 %s2360_s26, 1  ;;  %s1986_s4 = sshll.u32 %s2364_s27, 7 }
  0x58   : > { %s257_s5 = sadd.s32 %s1986_s4, %s1967_s11  ;;  %s250_s20 = scalar_lea.vmem [#allocation7], %s1965_s7 }
  0x59   : > { %s260_s9 = sshll.u32 %s250_s20, 4  ;;  %s1969_s3 = sshll.u32 %s257_s5, 7  ;;  %s261_s9 = int_to_ptr.vmem [resolvable:$true] %s260_s9 }
  0x5a   : > { %s259_s10 = scalar_lea.hbm %s3224_s2, %s1969_s3  ;;  %p2631_p0 = pnand %p2010_p8, %p2600_p7 }
  0x5b   : > { %s2201_s1 = scalar_lea.vmem %s261_s9, 8192  ;;  %s2376_s7 = smov [#allocation7]  }
  0x5c   : > { %p2190_p1 = pneg %p2631_p0  ;;  %p2202_p2 = scmp.ne.s32.totalorder %s261_s9, %s2201_s1 }
  0x5d   : > { %s2206_s11 = sshll.u32 %s2376_s7, 4  ;;  %s2207_s11 = int_to_ptr.vmem [resolvable:$false] %s2206_s11 }
  0x5e   : > { %p2204_p5 = pnand %p2202_p2, %p2190_p1  ;;  %s2208_s4 = scalar_lea.vmem %s2207_s11, 16384 }
  0x5f   : > { %p2209_p13 = scmp.lt.s32.totalorder %s261_s9, %s2207_s11  ;;  %p2210_p3 = scmp.lt.s32.totalorder %s2208_s4, %s2201_s1 }
  0x60   : > { %p2205_p11 = pneg %p2204_p5 }
  0x61   : > { %p2211_p6 = por %p2210_p3, %p2209_p13 }
  0x63   : > { %p2212_p10 = pnand %p2211_p6, %p2205_p11 }
  0x65   : > { %2215 = shalt.err (!%p2212_p10)
}
  0x66   : > { %s3273_s0 = smov 16   ;;  %s3274_s14 = smov 256  }
  0x67   : > { %2005 = dma.hbm_to_vmem [thread:$0]  (!%p2631_p0), %s259_s10, 8192, %s261_s9, %s2521_s24, %s3265_s13, %s3274_s14, %s3273_s0  }
  0x68   : > { %280 = sbr.rel (%p2533_p12) target bundleno = 528 (0x210), region = 36  ;;  %s282_s5 = sand.u32 (!%p2533_p12), 1, %s2344_s22  }
  0x69   : > { %s1971_s20 = sshll.u32 (!%p2533_p12), %s282_s5, 10  ;;  %s283_s3 = scalar_lea.sflag (!%p2533_p12), [#allocation3], %s282_s5 }
  0x6a   : > { %s2646_s25 = scalar_lea.vmem (!%p2533_p12), [#allocation2], %s1971_s20 }
  0x6d   : > { %2299 = dma.done.wait (%p2557_p9), %s283_s3, 16384  }
  0x6e   : > { %2301 = vsyncadd (%p2557_p9), %s283_s3, 4294950912  ;;  %s3275_s23 = sld [smem:[#allocation18_spill]]  ;;  %s291_s1 = sand.u32 1, %s2475_s29  }
  0x6f   : > { %s293_s24 = sand.u32 1, %s2332_s19   ;;  %s292_s18 = scalar_lea.sflag [#allocation6], %s291_s1 }
  0x70   : > { %s1972_s10 = sshll.u32 %s293_s24, 10 }
  0x71   : > { %s2654_s13 = scalar_lea.vmem [#allocation5], %s1972_s10 }
  0x74   : > { %p3276_p8 = scmp.ne.s32.totalorder %s3275_s23, 0 }
  0x76   : > { %2303 = dma.done.wait (%p3276_p8), %s292_s18, 16384  }
  0x77   : > { %2305 = vsyncadd (%p3276_p8), %s292_s18, 4294950912  ;;  %s302_s9 = sand.u32 1, %s2320_s16  }
  0x78   : > { %s2663_s30 = sshll.u32 %s302_s9, 9 }
  0x79   : > { %s2666_s7 = scalar_lea.vmem [#allocation7], %s2663_s30 }
  0x7a   : > { %2307 = dma.done.wait (%p2609_p4), %s292_s18, 8192  }
  0x7b   : > { %2309 = vsyncadd (%p2609_p4), %s292_s18, 4294959104  ;;  %v647_v0 = vld [vmem:[%s2654_s13 + $0xf8] sm:$0xff]  ;;  %v646_v2 = vld [vmem:[%s2654_s13 + $0xf0] sm:$0xff]  ;;  %s3277_s29 = sld [smem:[#allocation15_spill]]  ;;  %s2951_s20 = scalar_lea.vmem [#allocation8], %s2663_s30 }
  0x7c   : > { %v711_v1 = vld [vmem:[%s2654_s13 + $0x2f8] sm:$0xff]  ;;  %744 = vmatprep.subr.mxu0 %v647_v0  ;;  %v710_v3 = vld [vmem:[%s2654_s13 + $0x2f0] sm:$0xff]  ;;  %v645_v4 = vld [vmem:[%s2654_s13 + $0xe8] sm:$0xff]  ;;  %s3278_s14 = sld [smem:[#allocation24_spill]]  ;;  %s1803_s24 = sshll.u32 %s2951_s20, 4  ;;  %s3141_s24 = int_to_ptr.vmem [resolvable:$true] %s1803_s24 }
  0x7d   : > { %1001 = vmatprep.subr.mxu1 %v711_v1  ;;  %v709_v5 = vld [vmem:[%s2654_s13 + $0x2e8] sm:$0xff]  ;;  %745 = vmatpush1.msra.mxu0 %v646_v2  ;;  %v644_v6 = vld [vmem:[%s2654_s13 + $0xe0] sm:$0xff]  ;;  %v643_v8 = vld [vmem:[%s2654_s13 + $0xd8] sm:$0xff]  ;;  %s3279_s3 = sld [smem:[#allocation16_spill]]  ;;  %p3281_p7 = scmp.ne.s32.totalorder %s3270_s8, 0 }
  0x7e   : > { %1002 = vmatpush1.msra.mxu1 %v710_v3  ;;  %v708_v7 = vld [vmem:[%s2654_s13 + $0x2e0] sm:$0xff]  ;;  %746 = vmatprep.subr.mxu0 %v645_v4  ;;  %v707_v9 = vld [vmem:[%s2654_s13 + $0x2d8] sm:$0xff]  ;;  %v642_v10 = vld [vmem:[%s2654_s13 + $0xd0] sm:$0xff] }
  0x7f   : > { %1003 = vmatprep.subr.mxu1 %v709_v5  ;;  %v706_v11 = vld [vmem:[%s2654_s13 + $0x2d0] sm:$0xff]  ;;  %747 = vmatpush1.msra.mxu0 %v644_v6  ;;  %v641_v12 = vld [vmem:[%s2654_s13 + $0xc8] sm:$0xff]  ;;  %v640_v14 = vld [vmem:[%s2654_s13 + $0xc0] sm:$0xff] }
  0x80   : > { %1004 = vmatpush1.msra.mxu1 %v708_v7  ;;  %v705_v13 = vld [vmem:[%s2654_s13 + $0x2c8] sm:$0xff]  ;;  %748 = vmatprep.subr.mxu0 %v643_v8  ;;  %v704_v15 = vld [vmem:[%s2654_s13 + $0x2c0] sm:$0xff]  ;;  %v639_v16 = vld [vmem:[%s2654_s13 + $0xb8] sm:$0xff] }
  0x81   : > { %1005 = vmatprep.subr.mxu1 %v707_v9  ;;  %749 = vmatpush1.msra.mxu0 %v642_v10  ;;  %v703_v17 = vld [vmem:[%s2654_s13 + $0x2b8] sm:$0xff]  ;;  %v638_v18 = vld [vmem:[%s2654_s13 + $0xb0] sm:$0xff]  ;;  %v637_v20 = vld [vmem:[%s2654_s13 + $0xa8] sm:$0xff]  ;;  %s2929_s21 = sshll.u32 %s3277_s29, 1  ;;  %s2216_s29 = scalar_lea.vmem %s3141_s24, 8192 }
  0x82   : > { %1006 = vmatpush1.msra.mxu1 %v706_v11  ;;  %750 = vmatprep.subr.mxu0 %v641_v12  ;;  %v702_v19 = vld [vmem:[%s2654_s13 + $0x2b0] sm:$0xff]  ;;  %v701_v21 = vld [vmem:[%s2654_s13 + $0x2a8] sm:$0xff]  ;;  %v636_v22 = vld [vmem:[%s2654_s13 + $0xa0] sm:$0xff]  ;;  %p350_p12 = scmp.lt.s32.totalorder %s2929_s21, 3  ;;  %p2217_p9 = scmp.ne.s32.totalorder %s3141_s24, %s2216_s29 }
  0x83   : > { %1007 = vmatprep.subr.mxu1 %v705_v13  ;;  %751 = vmatpush1.msra.mxu0 %v640_v14  ;;  %v700_v23 = vld [vmem:[%s2654_s13 + $0x2a0] sm:$0xff]  ;;  %v635_v24 = vld [vmem:[%s2654_s13 + $0x98] sm:$0xff]  ;;  %v634_v26 = vld [vmem:[%s2654_s13 + $0x90] sm:$0xff] }
  0x84   : > { %1008 = vmatpush1.msra.mxu1 %v704_v15  ;;  %752 = vmatprep.subr.mxu0 %v639_v16  ;;  %v699_v25 = vld [vmem:[%s2654_s13 + $0x298] sm:$0xff]  ;;  %v698_v27 = vld [vmem:[%s2654_s13 + $0x290] sm:$0xff]  ;;  %v633_v28 = vld [vmem:[%s2654_s13 + $0x88] sm:$0xff]  ;;  %s351_s11 = scalar_select %p350_p12, %s2929_s21, 3 }
  0x85   : > { %1009 = vmatprep.subr.mxu1 %v703_v17  ;;  %753 = vmatpush1.msra.mxu0 %v638_v18  ;;  %v697_v29 = vld [vmem:[%s2654_s13 + $0x288] sm:$0xff]  ;;  %v632_v30 = vld [vmem:[%s2654_s13 + $0x80] sm:$0xff]  ;;  %v631_v32 = vld [vmem:[%s2654_s13 + $0x78] sm:$0xff]  ;;  %p2218_p4 = pnand %p2217_p9, %p3281_p7 }
  0x86   : > { %1010 = vmatpush1.msra.mxu1 %v702_v19  ;;  %754 = vmatprep.subr.mxu0 %v637_v20  ;;  %v696_v31 = vld [vmem:[%s2654_s13 + $0x280] sm:$0xff]  ;;  %v695_v33 = vld [vmem:[%s2654_s13 + $0x278] sm:$0xff]  ;;  %v630_v34 = vld [vmem:[%s2654_s13 + $0x70] sm:$0xff]  ;;  %s352_s5 = scalar_lea.vmem %s3278_s14, %s351_s11 }
  0x87   : > { %1011 = vmatprep.subr.mxu1 %v701_v21  ;;  %755 = vmatpush1.msra.mxu0 %v636_v22  ;;  %v694_v35 = vld [vmem:[%s2654_s13 + $0x270] sm:$0xff]  ;;  %v629_v36 = vld [vmem:[%s2654_s13 + $0x68] sm:$0xff]  ;;  %v628_v38 = vld [vmem:[%s2654_s13 + $0x60] sm:$0xff]  ;;  %p2219_p10 = pneg %p2218_p4 }
  0x88   : > { %1012 = vmatpush1.msra.mxu1 %v700_v23  ;;  %756 = vmatprep.subr.mxu0 %v635_v24  ;;  %v693_v37 = vld [vmem:[%s2654_s13 + $0x268] sm:$0xff]  ;;  %v692_v39 = vld [vmem:[%s2654_s13 + $0x260] sm:$0xff]  ;;  %v627_v40 = vld [vmem:[%s2654_s13 + $0x58] sm:$0xff] }
  0x89   : > { %1013 = vmatprep.subr.mxu1 %v699_v25  ;;  %757 = vmatpush1.msra.mxu0 %v634_v26  ;;  %v691_v41 = vld [vmem:[%s2654_s13 + $0x258] sm:$0xff]  ;;  %v626_v42 = vld [vmem:[%s2654_s13 + $0x50] sm:$0xff]  ;;  %v625_v44 = vld [vmem:[%s2654_s13 + $0x48] sm:$0xff] }
  0x8a   : > { %1014 = vmatpush1.msra.mxu1 %v698_v27  ;;  %758 = vmatprep.subr.mxu0 %v633_v28  ;;  %v690_v43 = vld [vmem:[%s2654_s13 + $0x250] sm:$0xff]  ;;  %v689_v45 = vld [vmem:[%s2654_s13 + $0x248] sm:$0xff]  ;;  %v624_v46 = vld [vmem:[%s2654_s13 + $0x40] sm:$0xff] }
  0x8b   : > { %1015 = vmatprep.subr.mxu1 %v697_v29  ;;  %759 = vmatpush1.msra.mxu0 %v632_v30  ;;  %v688_v47 = vld [vmem:[%s2654_s13 + $0x240] sm:$0xff]  ;;  %v623_v48 = vld [vmem:[%s2654_s13 + $0x38] sm:$0xff]  ;;  %v622_v50 = vld [vmem:[%s2654_s13 + $0x30] sm:$0xff] }
  0x8c   : > { %1016 = vmatpush1.msra.mxu1 %v696_v31  ;;  %760 = vmatprep.subr.mxu0 %v631_v32  ;;  %v687_v49 = vld [vmem:[%s2654_s13 + $0x238] sm:$0xff]  ;;  %v686_v51 = vld [vmem:[%s2654_s13 + $0x230] sm:$0xff]  ;;  %v621_v52 = vld [vmem:[%s2654_s13 + $0x28] sm:$0xff] }
  0x8d   : > { %1017 = vmatprep.subr.mxu1 %v695_v33  ;;  %761 = vmatpush1.msra.mxu0 %v630_v34  ;;  %v685_v53 = vld [vmem:[%s2654_s13 + $0x228] sm:$0xff]  ;;  %v620_v54 = vld [vmem:[%s2654_s13 + $0x20] sm:$0xff]  ;;  %v619_v56 = vld [vmem:[%s2654_s13 + $0x18] sm:$0xff] }
  0x8e   : > { %1018 = vmatpush1.msra.mxu1 %v694_v35  ;;  %762 = vmatprep.subr.mxu0 %v629_v36  ;;  %v684_v55 = vld [vmem:[%s2654_s13 + $0x220] sm:$0xff]  ;;  %v683_v57 = vld [vmem:[%s2654_s13 + $0x218] sm:$0xff]  ;;  %v618_v58 = vld [vmem:[%s2654_s13 + $0x10] sm:$0xff] }
  0x8f   : > { %1019 = vmatprep.subr.mxu1 %v693_v37  ;;  %763 = vmatpush1.msra.mxu0 %v628_v38  ;;  %v682_v59 = vld [vmem:[%s2654_s13 + $0x210] sm:$0xff]  ;;  %v617_v60 = vld [vmem:[%s2654_s13 + $0x8] sm:$0xff]  ;;  %v616_v62 = vld [vmem:[%s2654_s13] sm:$0xff] }
  0x90   : > { %1020 = vmatpush1.msra.mxu1 %v692_v39  ;;  %764 = vmatprep.subr.mxu0 %v627_v40  ;;  %v681_v61 = vld [vmem:[%s2654_s13 + $0x208] sm:$0xff]  ;;  %v680_v63 = vld [vmem:[%s2654_s13 + $0x200] sm:$0xff]  ;;  %v679_v0 = vld [vmem:[%s2654_s13 + $0x1f8] sm:$0xff] }
  0x91   : > { %1021 = vmatprep.subr.mxu1 %v691_v41  ;;  %765 = vmatpush1.msra.mxu0 %v626_v42  ;;  %v743_v1 = vld [vmem:[%s2654_s13 + $0x3f8] sm:$0xff]  ;;  %v678_v2 = vld [vmem:[%s2654_s13 + $0x1f0] sm:$0xff]  ;;  %v677_v4 = vld [vmem:[%s2654_s13 + $0x1e8] sm:$0xff] }
  0x92   : > { %1022 = vmatpush1.msra.mxu1 %v690_v43  ;;  %766 = vmatprep.subr.mxu0 %v625_v44  ;;  %v742_v3 = vld [vmem:[%s2654_s13 + $0x3f0] sm:$0xff]  ;;  %v741_v5 = vld [vmem:[%s2654_s13 + $0x3e8] sm:$0xff]  ;;  %v676_v6 = vld [vmem:[%s2654_s13 + $0x1e0] sm:$0xff] }
  0x93   : > { %1023 = vmatprep.subr.mxu1 %v689_v45  ;;  %767 = vmatpush1.msra.mxu0 %v624_v46  ;;  %v740_v7 = vld [vmem:[%s2654_s13 + $0x3e0] sm:$0xff]  ;;  %v675_v8 = vld [vmem:[%s2654_s13 + $0x1d8] sm:$0xff]  ;;  %v674_v10 = vld [vmem:[%s2654_s13 + $0x1d0] sm:$0xff] }
  0x94   : > { %1024 = vmatpush1.msra.mxu1 %v688_v47  ;;  %768 = vmatprep.subr.mxu0 %v623_v48  ;;  %v739_v9 = vld [vmem:[%s2654_s13 + $0x3d8] sm:$0xff]  ;;  %v738_v11 = vld [vmem:[%s2654_s13 + $0x3d0] sm:$0xff]  ;;  %v673_v12 = vld [vmem:[%s2654_s13 + $0x1c8] sm:$0xff] }
  0x95   : > { %1025 = vmatprep.subr.mxu1 %v687_v49  ;;  %769 = vmatpush1.msra.mxu0 %v622_v50  ;;  %v737_v13 = vld [vmem:[%s2654_s13 + $0x3c8] sm:$0xff]  ;;  %v672_v14 = vld [vmem:[%s2654_s13 + $0x1c0] sm:$0xff]  ;;  %v671_v16 = vld [vmem:[%s2654_s13 + $0x1b8] sm:$0xff] }
  0x96   : > { %1026 = vmatpush1.msra.mxu1 %v686_v51  ;;  %770 = vmatprep.subr.mxu0 %v621_v52  ;;  %v736_v15 = vld [vmem:[%s2654_s13 + $0x3c0] sm:$0xff]  ;;  %v735_v17 = vld [vmem:[%s2654_s13 + $0x3b8] sm:$0xff]  ;;  %v670_v18 = vld [vmem:[%s2654_s13 + $0x1b0] sm:$0xff] }
  0x97   : > { %1027 = vmatprep.subr.mxu1 %v685_v53  ;;  %771 = vmatpush1.msra.mxu0 %v620_v54  ;;  %v734_v19 = vld [vmem:[%s2654_s13 + $0x3b0] sm:$0xff]  ;;  %v669_v20 = vld [vmem:[%s2654_s13 + $0x1a8] sm:$0xff]  ;;  %v668_v22 = vld [vmem:[%s2654_s13 + $0x1a0] sm:$0xff] }
  0x98   : > { %1028 = vmatpush1.msra.mxu1 %v684_v55  ;;  %772 = vmatprep.subr.mxu0 %v619_v56  ;;  %v733_v21 = vld [vmem:[%s2654_s13 + $0x3a8] sm:$0xff]  ;;  %v732_v23 = vld [vmem:[%s2654_s13 + $0x3a0] sm:$0xff]  ;;  %v667_v24 = vld [vmem:[%s2654_s13 + $0x198] sm:$0xff] }
  0x99   : > { %1029 = vmatprep.subr.mxu1 %v683_v57  ;;  %773 = vmatpush1.msra.mxu0 %v618_v58  ;;  %v731_v25 = vld [vmem:[%s2654_s13 + $0x398] sm:$0xff]  ;;  %v666_v26 = vld [vmem:[%s2654_s13 + $0x190] sm:$0xff]  ;;  %v665_v28 = vld [vmem:[%s2654_s13 + $0x188] sm:$0xff] }
  0x9a   : > { %1030 = vmatpush1.msra.mxu1 %v682_v59  ;;  %774 = vmatprep.subr.mxu0 %v617_v60  ;;  %v730_v27 = vld [vmem:[%s2654_s13 + $0x390] sm:$0xff]  ;;  %v729_v29 = vld [vmem:[%s2654_s13 + $0x388] sm:$0xff]  ;;  %v664_v30 = vld [vmem:[%s2654_s13 + $0x180] sm:$0xff] }
  0x9b   : > { %1031 = vmatprep.subr.mxu1 %v681_v61  ;;  %775 = vmatpush1.msra.mxu0 %v616_v62  ;;  %v728_v31 = vld [vmem:[%s2654_s13 + $0x380] sm:$0xff]  ;;  %v663_v32 = vld [vmem:[%s2654_s13 + $0x178] sm:$0xff]  ;;  %v662_v34 = vld [vmem:[%s2654_s13 + $0x170] sm:$0xff] }
  0x9c   : > { %1032 = vmatpush1.msra.mxu1 %v680_v63  ;;  %776 = vmatprep.subr.mxu0 %v679_v0  ;;  %v727_v33 = vld [vmem:[%s2654_s13 + $0x378] sm:$0xff]  ;;  %v726_v35 = vld [vmem:[%s2654_s13 + $0x370] sm:$0xff]  ;;  %v661_v36 = vld [vmem:[%s2654_s13 + $0x168] sm:$0xff] }
  0x9d   : > { %1033 = vmatprep.subr.mxu1 %v743_v1  ;;  %777 = vmatpush2.msra.mxu0 %v678_v2  ;;  %v725_v37 = vld [vmem:[%s2654_s13 + $0x368] sm:$0xff]  ;;  %v660_v38 = vld [vmem:[%s2654_s13 + $0x160] sm:$0xff]  ;;  %v659_v40 = vld [vmem:[%s2654_s13 + $0x158] sm:$0xff] }
  0x9e   : > { %1034 = vmatpush2.msra.mxu1 %v742_v3  ;;  %778 = vmatprep.subr.mxu0 %v677_v4  ;;  %v724_v39 = vld [vmem:[%s2654_s13 + $0x360] sm:$0xff]  ;;  %v723_v41 = vld [vmem:[%s2654_s13 + $0x358] sm:$0xff]  ;;  %v658_v42 = vld [vmem:[%s2654_s13 + $0x150] sm:$0xff] }
  0x9f   : > { %1035 = vmatprep.subr.mxu1 %v741_v5  ;;  %779 = vmatpush2.msra.mxu0 %v676_v6  ;;  %v722_v43 = vld [vmem:[%s2654_s13 + $0x350] sm:$0xff]  ;;  %v657_v44 = vld [vmem:[%s2654_s13 + $0x148] sm:$0xff]  ;;  %v656_v46 = vld [vmem:[%s2654_s13 + $0x140] sm:$0xff] }
  0xa0   : > { %1036 = vmatpush2.msra.mxu1 %v740_v7  ;;  %780 = vmatprep.subr.mxu0 %v675_v8  ;;  %v721_v45 = vld [vmem:[%s2654_s13 + $0x348] sm:$0xff]  ;;  %v720_v47 = vld [vmem:[%s2654_s13 + $0x340] sm:$0xff]  ;;  %v655_v48 = vld [vmem:[%s2654_s13 + $0x138] sm:$0xff] }
  0xa1   : > { %1037 = vmatprep.subr.mxu1 %v739_v9  ;;  %781 = vmatpush2.msra.mxu0 %v674_v10  ;;  %v719_v49 = vld [vmem:[%s2654_s13 + $0x338] sm:$0xff]  ;;  %v654_v50 = vld [vmem:[%s2654_s13 + $0x130] sm:$0xff]  ;;  %v653_v52 = vld [vmem:[%s2654_s13 + $0x128] sm:$0xff] }
  0xa2   : > { %1038 = vmatpush2.msra.mxu1 %v738_v11  ;;  %782 = vmatprep.subr.mxu0 %v673_v12  ;;  %v718_v51 = vld [vmem:[%s2654_s13 + $0x330] sm:$0xff]  ;;  %v717_v53 = vld [vmem:[%s2654_s13 + $0x328] sm:$0xff]  ;;  %v652_v54 = vld [vmem:[%s2654_s13 + $0x120] sm:$0xff] }
  0xa3   : > { %1039 = vmatprep.subr.mxu1 %v737_v13  ;;  %783 = vmatpush2.msra.mxu0 %v672_v14  ;;  %v716_v55 = vld [vmem:[%s2654_s13 + $0x320] sm:$0xff]  ;;  %v651_v56 = vld [vmem:[%s2654_s13 + $0x118] sm:$0xff]  ;;  %v650_v58 = vld [vmem:[%s2654_s13 + $0x110] sm:$0xff] }
  0xa4   : > { %1040 = vmatpush2.msra.mxu1 %v736_v15  ;;  %784 = vmatprep.subr.mxu0 %v671_v16  ;;  %v715_v57 = vld [vmem:[%s2654_s13 + $0x318] sm:$0xff]  ;;  %v714_v59 = vld [vmem:[%s2654_s13 + $0x310] sm:$0xff]  ;;  %v649_v60 = vld [vmem:[%s2654_s13 + $0x108] sm:$0xff] }
  0xa5   : > { %1041 = vmatprep.subr.mxu1 %v735_v17  ;;  %785 = vmatpush2.msra.mxu0 %v670_v18  ;;  %v713_v61 = vld [vmem:[%s2654_s13 + $0x308] sm:$0xff]  ;;  %v648_v62 = vld [vmem:[%s2654_s13 + $0x100] sm:$0xff]  ;;  %v491_v1 = vld [vmem:[%s2646_s25 + $0x18] sm:$0xff] }
  0xa6   : > { %1042 = vmatpush2.msra.mxu1 %v734_v19  ;;  %786 = vmatprep.subr.mxu0 %v669_v20  ;;  %v489_v63 = vld [vmem:[%s2646_s25 + $0x8] sm:$0xff]  ;;  %v712_v0 = vld [vmem:[%s2654_s13 + $0x300] sm:$0xff]  ;;  %v490_v3 = vld [vmem:[%s2646_s25 + $0x10] sm:$0xff]  ;;  %s3280_s13 = sld [smem:[#allocation25_spill]] }
  0xa7   : > { %1043 = vmatprep.subr.mxu1 %v733_v21  ;;  %787 = vmatpush2.msra.mxu0 %v668_v22  ;;  %v488_v2 = vld [vmem:[%s2646_s25] sm:$0xff]  ;;  %v493_v4 = vld [vmem:[%s2646_s25 + $0x28] sm:$0xff]  ;;  %v495_v5 = vld [vmem:[%s2646_s25 + $0x38] sm:$0xff] }
  0xa8   : > { %1044 = vmatpush2.msra.mxu1 %v732_v23  ;;  %788 = vmatprep.subr.mxu0 %v667_v24  ;;  %v492_v6 = vld [vmem:[%s2646_s25 + $0x20] sm:$0xff]  ;;  %v494_v7 = vld [vmem:[%s2646_s25 + $0x30] sm:$0xff]  ;;  %v497_v8 = vld [vmem:[%s2646_s25 + $0x48] sm:$0xff] }
  0xa9   : > { %1045 = vmatprep.subr.mxu1 %v731_v25  ;;  %789 = vmatpush2.msra.mxu0 %v666_v26  ;;  %v499_v9 = vld [vmem:[%s2646_s25 + $0x58] sm:$0xff]  ;;  %v496_v10 = vld [vmem:[%s2646_s25 + $0x40] sm:$0xff]  ;;  %v498_v11 = vld [vmem:[%s2646_s25 + $0x50] sm:$0xff] }
  0xaa   : > { %1046 = vmatpush2.msra.mxu1 %v730_v27  ;;  %790 = vmatprep.subr.mxu0 %v665_v28  ;;  %v501_v12 = vld [vmem:[%s2646_s25 + $0x68] sm:$0xff]  ;;  %v503_v13 = vld [vmem:[%s2646_s25 + $0x78] sm:$0xff]  ;;  %v500_v14 = vld [vmem:[%s2646_s25 + $0x60] sm:$0xff] }
  0xab   : > { %1047 = vmatprep.subr.mxu1 %v729_v29  ;;  %791 = vmatpush2.msra.mxu0 %v664_v30  ;;  %v502_v15 = vld [vmem:[%s2646_s25 + $0x70] sm:$0xff]  ;;  %v505_v16 = vld [vmem:[%s2646_s25 + $0x88] sm:$0xff]  ;;  %v507_v17 = vld [vmem:[%s2646_s25 + $0x98] sm:$0xff] }
  0xac   : > { %1048 = vmatpush2.msra.mxu1 %v728_v31  ;;  %792 = vmatprep.subr.mxu0 %v663_v32  ;;  %v504_v18 = vld [vmem:[%s2646_s25 + $0x80] sm:$0xff]  ;;  %v506_v19 = vld [vmem:[%s2646_s25 + $0x90] sm:$0xff]  ;;  %v509_v20 = vld [vmem:[%s2646_s25 + $0xa8] sm:$0xff] }
  0xad   : > { %1049 = vmatprep.subr.mxu1 %v727_v33  ;;  %793 = vmatpush2.msra.mxu0 %v662_v34  ;;  %v511_v21 = vld [vmem:[%s2646_s25 + $0xb8] sm:$0xff]  ;;  %v508_v22 = vld [vmem:[%s2646_s25 + $0xa0] sm:$0xff]  ;;  %v510_v23 = vld [vmem:[%s2646_s25 + $0xb0] sm:$0xff] }
  0xae   : > { %1050 = vmatpush2.msra.mxu1 %v726_v35  ;;  %794 = vmatprep.subr.mxu0 %v661_v36  ;;  %v513_v24 = vld [vmem:[%s2646_s25 + $0xc8] sm:$0xff]  ;;  %v515_v25 = vld [vmem:[%s2646_s25 + $0xd8] sm:$0xff]  ;;  %v512_v26 = vld [vmem:[%s2646_s25 + $0xc0] sm:$0xff] }
  0xaf   : > { %1051 = vmatprep.subr.mxu1 %v725_v37  ;;  %795 = vmatpush2.msra.mxu0 %v660_v38  ;;  %v514_v27 = vld [vmem:[%s2646_s25 + $0xd0] sm:$0xff]  ;;  %v517_v28 = vld [vmem:[%s2646_s25 + $0xe8] sm:$0xff]  ;;  %v519_v29 = vld [vmem:[%s2646_s25 + $0xf8] sm:$0xff] }
  0xb0   : > { %1052 = vmatpush2.msra.mxu1 %v724_v39  ;;  %796 = vmatprep.subr.mxu0 %v659_v40  ;;  %v516_v30 = vld [vmem:[%s2646_s25 + $0xe0] sm:$0xff]  ;;  %v518_v31 = vld [vmem:[%s2646_s25 + $0xf0] sm:$0xff]  ;;  %v521_v32 = vld [vmem:[%s2646_s25 + $0x108] sm:$0xff] }
  0xb1   : > { %1053 = vmatprep.subr.mxu1 %v723_v41  ;;  %797 = vmatpush2.msra.mxu0 %v658_v42  ;;  %v523_v33 = vld [vmem:[%s2646_s25 + $0x118] sm:$0xff]  ;;  %v520_v34 = vld [vmem:[%s2646_s25 + $0x100] sm:$0xff]  ;;  %v522_v35 = vld [vmem:[%s2646_s25 + $0x110] sm:$0xff] }
  0xb2   : > { %1054 = vmatpush2.msra.mxu1 %v722_v43  ;;  %798 = vmatprep.subr.mxu0 %v657_v44  ;;  %v525_v36 = vld [vmem:[%s2646_s25 + $0x128] sm:$0xff]  ;;  %v527_v37 = vld [vmem:[%s2646_s25 + $0x138] sm:$0xff]  ;;  %v524_v38 = vld [vmem:[%s2646_s25 + $0x120] sm:$0xff] }
  0xb3   : > { %1055 = vmatprep.subr.mxu1 %v721_v45  ;;  %799 = vmatpush2.msra.mxu0 %v656_v46  ;;  %v526_v39 = vld [vmem:[%s2646_s25 + $0x130] sm:$0xff]  ;;  %v529_v40 = vld [vmem:[%s2646_s25 + $0x148] sm:$0xff]  ;;  %v531_v41 = vld [vmem:[%s2646_s25 + $0x158] sm:$0xff] }
  0xb4   : > { %1056 = vmatpush2.msra.mxu1 %v720_v47  ;;  %800 = vmatprep.subr.mxu0 %v655_v48  ;;  %v528_v42 = vld [vmem:[%s2646_s25 + $0x140] sm:$0xff]  ;;  %v530_v43 = vld [vmem:[%s2646_s25 + $0x150] sm:$0xff]  ;;  %v533_v44 = vld [vmem:[%s2646_s25 + $0x168] sm:$0xff] }
  0xb5   : > { %1057 = vmatprep.subr.mxu1 %v719_v49  ;;  %801 = vmatpush2.msra.mxu0 %v654_v50  ;;  %v535_v45 = vld [vmem:[%s2646_s25 + $0x178] sm:$0xff]  ;;  %v532_v46 = vld [vmem:[%s2646_s25 + $0x160] sm:$0xff]  ;;  %v534_v47 = vld [vmem:[%s2646_s25 + $0x170] sm:$0xff] }
  0xb6   : > { %1058 = vmatpush2.msra.mxu1 %v718_v51  ;;  %802 = vmatprep.subr.mxu0 %v653_v52  ;;  %v537_v48 = vld [vmem:[%s2646_s25 + $0x188] sm:$0xff]  ;;  %v539_v49 = vld [vmem:[%s2646_s25 + $0x198] sm:$0xff]  ;;  %v536_v50 = vld [vmem:[%s2646_s25 + $0x180] sm:$0xff] }
  0xb7   : > { %1059 = vmatprep.subr.mxu1 %v717_v53  ;;  %803 = vmatpush2.msra.mxu0 %v652_v54  ;;  %v538_v51 = vld [vmem:[%s2646_s25 + $0x190] sm:$0xff]  ;;  %v541_v52 = vld [vmem:[%s2646_s25 + $0x1a8] sm:$0xff]  ;;  %v543_v53 = vld [vmem:[%s2646_s25 + $0x1b8] sm:$0xff] }
  0xb8   : > { %1060 = vmatpush2.msra.mxu1 %v716_v55  ;;  %804 = vmatprep.subr.mxu0 %v651_v56  ;;  %v540_v54 = vld [vmem:[%s2646_s25 + $0x1a0] sm:$0xff]  ;;  %v542_v55 = vld [vmem:[%s2646_s25 + $0x1b0] sm:$0xff]  ;;  %v545_v56 = vld [vmem:[%s2646_s25 + $0x1c8] sm:$0xff] }
  0xb9   : > { %1061 = vmatprep.subr.mxu1 %v715_v57  ;;  %805 = vmatpush2.msra.mxu0 %v650_v58  ;;  %v547_v57 = vld [vmem:[%s2646_s25 + $0x1d8] sm:$0xff]  ;;  %v544_v58 = vld [vmem:[%s2646_s25 + $0x1c0] sm:$0xff] }
  0xba   : > { %1062 = vmatpush2.msra.mxu1 %v714_v59  ;;  %806 = vmatprep.subr.mxu0 %v649_v60  ;;  %v546_v59 = vld [vmem:[%s2646_s25 + $0x1d0] sm:$0xff]  ;;  %v549_v60 = vld [vmem:[%s2646_s25 + $0x1e8] sm:$0xff] }
  0xbb   : > { %1063 = vmatprep.subr.mxu1 %v713_v61  ;;  %807 = vmatpush2.msra.mxu0 %v648_v62  ;;  %v551_v61 = vld [vmem:[%s2646_s25 + $0x1f8] sm:$0xff]  ;;  %v548_v62 = vld [vmem:[%s2646_s25 + $0x1e0] sm:$0xff] }
  0xbc   : > { %808 = vmatprep.mubr.f32.mxu0 %v489_v63  ;;  %1064 = vmatpush2.msra.mxu1 %v712_v0  ;;  %v550_v63 = vld [vmem:[%s2646_s25 + $0x1f0] sm:$0xff]  ;;  %v553_v0 = vld [vmem:[%s2646_s25 + $0x208] sm:$0xff] }
  0xbd   : > { %1065 = vmatprep.mubr.f32.mxu1 %v491_v1  ;;  %809 = vmatmul.mubr.f32.vlgmr.msra.gmra.mxu0 %v488_v2  ;;  %v555_v1 = vld [vmem:[%s2646_s25 + $0x218] sm:$0xff]  ;;  %v552_v2 = vld [vmem:[%s2646_s25 + $0x200] sm:$0xff] }
  0xbe   : > { %1066 = vmatmul.mubr.f32.vlgmr.msra.gmra.mxu1 %v490_v3  ;;  %814 = vmatprep.mubr.f32.mxu0 %v493_v4  ;;  %v554_v3 = vld [vmem:[%s2646_s25 + $0x210] sm:$0xff]  ;;  %v557_v4 = vld [vmem:[%s2646_s25 + $0x228] sm:$0xff] }
  0xbf   : > { %1071 = vmatprep.mubr.f32.mxu1 %v495_v5  ;;  %v559_v5 = vld [vmem:[%s2646_s25 + $0x238] sm:$0xff] }
  0xc1   : > { %815 = vmatmul.mubr.f32.gmra.mxu0 %v492_v6  ;;  %v556_v6 = vld [vmem:[%s2646_s25 + $0x220] sm:$0xff] }
  0xc2   : > { %1072 = vmatmul.mubr.f32.gmra.mxu1 %v494_v7  ;;  %820 = vmatprep.mubr.f32.mxu0 %v497_v8  ;;  %v558_v7 = vld [vmem:[%s2646_s25 + $0x230] sm:$0xff]  ;;  %v561_v8 = vld [vmem:[%s2646_s25 + $0x248] sm:$0xff] }
  0xc3   : > { %1077 = vmatprep.mubr.f32.mxu1 %v499_v9  ;;  %v563_v9 = vld [vmem:[%s2646_s25 + $0x258] sm:$0xff] }
  0xc5   : > { %821 = vmatmul.mubr.f32.gmra.mxu0 %v496_v10  ;;  %v560_v10 = vld [vmem:[%s2646_s25 + $0x240] sm:$0xff] }
  0xc6   : > { %1078 = vmatmul.mubr.f32.gmra.mxu1 %v498_v11  ;;  %826 = vmatprep.mubr.f32.mxu0 %v501_v12  ;;  %v562_v11 = vld [vmem:[%s2646_s25 + $0x250] sm:$0xff]  ;;  %v565_v12 = vld [vmem:[%s2646_s25 + $0x268] sm:$0xff] }
  0xc7   : > { %1083 = vmatprep.mubr.f32.mxu1 %v503_v13  ;;  %v567_v13 = vld [vmem:[%s2646_s25 + $0x278] sm:$0xff] }
  0xc9   : > { %827 = vmatmul.mubr.f32.gmra.mxu0 %v500_v14  ;;  %v564_v14 = vld [vmem:[%s2646_s25 + $0x260] sm:$0xff] }
  0xca   : > { %1084 = vmatmul.mubr.f32.gmra.mxu1 %v502_v15  ;;  %832 = vmatprep.mubr.f32.mxu0 %v505_v16  ;;  %v566_v15 = vld [vmem:[%s2646_s25 + $0x270] sm:$0xff]  ;;  %v569_v16 = vld [vmem:[%s2646_s25 + $0x288] sm:$0xff] }
  0xcb   : > { %1089 = vmatprep.mubr.f32.mxu1 %v507_v17  ;;  %v571_v17 = vld [vmem:[%s2646_s25 + $0x298] sm:$0xff] }
  0xcd   : > { %833 = vmatmul.mubr.f32.gmra.mxu0 %v504_v18  ;;  %v568_v18 = vld [vmem:[%s2646_s25 + $0x280] sm:$0xff] }
  0xce   : > { %1090 = vmatmul.mubr.f32.gmra.mxu1 %v506_v19  ;;  %838 = vmatprep.mubr.f32.mxu0 %v509_v20  ;;  %v570_v19 = vld [vmem:[%s2646_s25 + $0x290] sm:$0xff]  ;;  %v573_v20 = vld [vmem:[%s2646_s25 + $0x2a8] sm:$0xff] }
  0xcf   : > { %1095 = vmatprep.mubr.f32.mxu1 %v511_v21  ;;  %v575_v21 = vld [vmem:[%s2646_s25 + $0x2b8] sm:$0xff] }
  0xd1   : > { %839 = vmatmul.mubr.f32.gmra.mxu0 %v508_v22  ;;  %v572_v22 = vld [vmem:[%s2646_s25 + $0x2a0] sm:$0xff] }
  0xd2   : > { %1096 = vmatmul.mubr.f32.gmra.mxu1 %v510_v23  ;;  %844 = vmatprep.mubr.f32.mxu0 %v513_v24  ;;  %v574_v23 = vld [vmem:[%s2646_s25 + $0x2b0] sm:$0xff]  ;;  %v577_v24 = vld [vmem:[%s2646_s25 + $0x2c8] sm:$0xff] }
  0xd3   : > { %1101 = vmatprep.mubr.f32.mxu1 %v515_v25  ;;  %v579_v25 = vld [vmem:[%s2646_s25 + $0x2d8] sm:$0xff] }
  0xd5   : > { %845 = vmatmul.mubr.f32.gmra.mxu0 %v512_v26  ;;  %v576_v26 = vld [vmem:[%s2646_s25 + $0x2c0] sm:$0xff] }
  0xd6   : > { %1102 = vmatmul.mubr.f32.gmra.mxu1 %v514_v27  ;;  %850 = vmatprep.mubr.f32.mxu0 %v517_v28  ;;  %v578_v27 = vld [vmem:[%s2646_s25 + $0x2d0] sm:$0xff]  ;;  %v581_v28 = vld [vmem:[%s2646_s25 + $0x2e8] sm:$0xff] }
  0xd7   : > { %1107 = vmatprep.mubr.f32.mxu1 %v519_v29  ;;  %v583_v29 = vld [vmem:[%s2646_s25 + $0x2f8] sm:$0xff] }
  0xd9   : > { %851 = vmatmul.mubr.f32.gmra.mxu0 %v516_v30  ;;  %v580_v30 = vld [vmem:[%s2646_s25 + $0x2e0] sm:$0xff] }
  0xda   : > { %1108 = vmatmul.mubr.f32.gmra.mxu1 %v518_v31  ;;  %856 = vmatprep.mubr.f32.mxu0 %v521_v32  ;;  %v582_v31 = vld [vmem:[%s2646_s25 + $0x2f0] sm:$0xff]  ;;  %v585_v32 = vld [vmem:[%s2646_s25 + $0x308] sm:$0xff] }
  0xdb   : > { %1113 = vmatprep.mubr.f32.mxu1 %v523_v33  ;;  %v587_v33 = vld [vmem:[%s2646_s25 + $0x318] sm:$0xff] }
  0xdd   : > { %857 = vmatmul.mubr.f32.gmra.mxu0 %v520_v34  ;;  %v584_v34 = vld [vmem:[%s2646_s25 + $0x300] sm:$0xff] }
  0xde   : > { %1114 = vmatmul.mubr.f32.gmra.mxu1 %v522_v35  ;;  %862 = vmatprep.mubr.f32.mxu0 %v525_v36  ;;  %v586_v35 = vld [vmem:[%s2646_s25 + $0x310] sm:$0xff]  ;;  %v589_v36 = vld [vmem:[%s2646_s25 + $0x328] sm:$0xff] }
  0xdf   : > { %1119 = vmatprep.mubr.f32.mxu1 %v527_v37  ;;  %v591_v37 = vld [vmem:[%s2646_s25 + $0x338] sm:$0xff] }
  0xe1   : > { %863 = vmatmul.mubr.f32.gmra.mxu0 %v524_v38  ;;  %v588_v38 = vld [vmem:[%s2646_s25 + $0x320] sm:$0xff] }
  0xe2   : > { %1120 = vmatmul.mubr.f32.gmra.mxu1 %v526_v39  ;;  %868 = vmatprep.mubr.f32.mxu0 %v529_v40  ;;  %v590_v39 = vld [vmem:[%s2646_s25 + $0x330] sm:$0xff]  ;;  %v593_v40 = vld [vmem:[%s2646_s25 + $0x348] sm:$0xff] }
  0xe3   : > { %1125 = vmatprep.mubr.f32.mxu1 %v531_v41  ;;  %v595_v41 = vld [vmem:[%s2646_s25 + $0x358] sm:$0xff] }
  0xe5   : > { %869 = vmatmul.mubr.f32.gmra.mxu0 %v528_v42  ;;  %v592_v42 = vld [vmem:[%s2646_s25 + $0x340] sm:$0xff] }
  0xe6   : > { %1126 = vmatmul.mubr.f32.gmra.mxu1 %v530_v43  ;;  %874 = vmatprep.mubr.f32.mxu0 %v533_v44  ;;  %v594_v43 = vld [vmem:[%s2646_s25 + $0x350] sm:$0xff]  ;;  %v597_v44 = vld [vmem:[%s2646_s25 + $0x368] sm:$0xff] }
  0xe7   : > { %1131 = vmatprep.mubr.f32.mxu1 %v535_v45  ;;  %v599_v45 = vld [vmem:[%s2646_s25 + $0x378] sm:$0xff] }
  0xe9   : > { %875 = vmatmul.mubr.f32.gmra.mxu0 %v532_v46  ;;  %v596_v46 = vld [vmem:[%s2646_s25 + $0x360] sm:$0xff] }
  0xea   : > { %1132 = vmatmul.mubr.f32.gmra.mxu1 %v534_v47  ;;  %880 = vmatprep.mubr.f32.mxu0 %v537_v48  ;;  %v598_v47 = vld [vmem:[%s2646_s25 + $0x370] sm:$0xff]  ;;  %v601_v48 = vld [vmem:[%s2646_s25 + $0x388] sm:$0xff] }
  0xeb   : > { %1137 = vmatprep.mubr.f32.mxu1 %v539_v49  ;;  %v603_v49 = vld [vmem:[%s2646_s25 + $0x398] sm:$0xff] }
  0xed   : > { %881 = vmatmul.mubr.f32.gmra.mxu0 %v536_v50  ;;  %v600_v50 = vld [vmem:[%s2646_s25 + $0x380] sm:$0xff] }
  0xee   : > { %1138 = vmatmul.mubr.f32.gmra.mxu1 %v538_v51  ;;  %886 = vmatprep.mubr.f32.mxu0 %v541_v52  ;;  %v602_v51 = vld [vmem:[%s2646_s25 + $0x390] sm:$0xff]  ;;  %v605_v52 = vld [vmem:[%s2646_s25 + $0x3a8] sm:$0xff] }
  0xef   : > { %1143 = vmatprep.mubr.f32.mxu1 %v543_v53  ;;  %v607_v53 = vld [vmem:[%s2646_s25 + $0x3b8] sm:$0xff] }
  0xf1   : > { %887 = vmatmul.mubr.f32.gmra.mxu0 %v540_v54  ;;  %v604_v54 = vld [vmem:[%s2646_s25 + $0x3a0] sm:$0xff] }
  0xf2   : > { %1144 = vmatmul.mubr.f32.gmra.mxu1 %v542_v55  ;;  %892 = vmatprep.mubr.f32.mxu0 %v545_v56  ;;  %v606_v55 = vld [vmem:[%s2646_s25 + $0x3b0] sm:$0xff]  ;;  %v609_v56 = vld [vmem:[%s2646_s25 + $0x3c8] sm:$0xff] }
  0xf3   : > { %1149 = vmatprep.mubr.f32.mxu1 %v547_v57  ;;  %v611_v57 = vld [vmem:[%s2646_s25 + $0x3d8] sm:$0xff] }
  0xf5   : > { %893 = vmatmul.mubr.f32.gmra.mxu0 %v544_v58  ;;  %v608_v58 = vld [vmem:[%s2646_s25 + $0x3c0] sm:$0xff] }
  0xf6   : > { %1150 = vmatmul.mubr.f32.gmra.mxu1 %v546_v59  ;;  %898 = vmatprep.mubr.f32.mxu0 %v549_v60  ;;  %v610_v59 = vld [vmem:[%s2646_s25 + $0x3d0] sm:$0xff]  ;;  %v613_v60 = vld [vmem:[%s2646_s25 + $0x3e8] sm:$0xff] }
  0xf7   : > { %1155 = vmatprep.mubr.f32.mxu1 %v551_v61  ;;  %v615_v61 = vld [vmem:[%s2646_s25 + $0x3f8] sm:$0xff] }
  0xf9   : > { %899 = vmatmul.mubr.f32.gmra.mxu0 %v548_v62  ;;  %v612_v62 = vld [vmem:[%s2646_s25 + $0x3e0] sm:$0xff] }
  0xfa   : > { %1156 = vmatmul.mubr.f32.gmra.mxu1 %v550_v63  ;;  %904 = vmatprep.mubr.f32.mxu0 %v553_v0  ;;  %v614_v63 = vld [vmem:[%s2646_s25 + $0x3f0] sm:$0xff]  ;;  %v1520_v0 = vlaneseq  ;;  %s1987_s25 = sshll.u32 %s3279_s3, 7 }
  0xfb   : > { %1161 = vmatprep.mubr.f32.mxu1 %v555_v1  ;;  %s1800_s23 = sadd.s32 %s1987_s25, %s2929_s21  ;;  %s2377_s21 = smov [#allocation8]  }
  0xfc   : > { %v1521_v1 = vshrl.u32 %v1520_v0, 7  ;;  %s1980_s1 = sshll.u32 %s1800_s23, 7  ;;  %s2220_s11 = sshll.u32 %s2377_s21, 4  ;;  %s2221_s11 = int_to_ptr.vmem [resolvable:$false] %s2220_s11 }
  0xfd   : > { %905 = vmatmul.mubr.f32.gmra.mxu0 %v552_v2  ;;  %v1517_v2 = vld [vmem:[%s352_s5] sm:$0x3]  ;;  %s3139_s30 = scalar_lea.hbm %s3280_s13, %s1980_s1  ;;  %s2222_s4 = scalar_lea.vmem %s2221_s11, 16384 }
  0xfe   : > { %1162 = vmatmul.mubr.f32.gmra.mxu1 %v554_v3  ;;  %910 = vmatprep.mubr.f32.mxu0 %v557_v4  ;;  %v1518_v3 = vadd.f32 1.0, %v1517_v2  ;;  %v1522_v4 = vsub.s32 0, %v1521_v1  ;;  %p2223_p6 = scmp.lt.s32.totalorder %s3141_s24, %s2221_s11  ;;  %p2224_p0 = scmp.lt.s32.totalorder %s2222_s4, %s2216_s29 }
  0xff   : > { %1167 = vmatprep.mubr.f32.mxu1 %v559_v5  ;;  %v1389_v5 = vld [vmem:[%s2666_s7] sm:$0xff] }
 0x100   : > { %p2225_p1 = por %p2224_p0, %p2223_p6 }
 0x101   : > { %911 = vmatmul.mubr.f32.gmra.mxu0 %v556_v6  ;;  %v1526_v6 = vsub.s32 1, %v1521_v1 }
 0x102   : > { %1168 = vmatmul.mubr.f32.gmra.mxu1 %v558_v7  ;;  %916 = vmatprep.mubr.f32.mxu0 %v561_v8  ;;  %v1390_v7 = vld [vmem:[%s2666_s7 + $0x8] sm:$0xff]  ;;  %v1453_v8 = vmul.f32 2.0, %v1389_v5  ;;  %p2226_p2 = pnand %p2225_p1, %p2219_p10 }
 0x103   : > { %1173 = vmatprep.mubr.f32.mxu1 %v563_v9  ;;  %v2938_v9 = vrot.slane %v1518_v3, %v1522_v4 }
 0x105   : > { %917 = vmatmul.mubr.f32.gmra.mxu0 %v560_v10  ;;  %v1391_v10 = vld [vmem:[%s2666_s7 + $0x10] sm:$0xff] }
 0x106   : > { %1174 = vmatmul.mubr.f32.gmra.mxu1 %v562_v11  ;;  %922 = vmatprep.mubr.f32.mxu0 %v565_v12  ;;  %v1454_v11 = vmul.f32 2.0, %v1390_v7  ;;  %v2941_v12 = vrot.slane %v1518_v3, %v1526_v6  ;;  %v1400_v6 = vld [vmem:[%s2666_s7 + $0x58] sm:$0xff] }
 0x107   : > { %1179 = vmatprep.mubr.f32.mxu1 %v567_v13 }
 0x109   : > { %923 = vmatmul.mubr.f32.gmra.mxu0 %v564_v14 }
 0x10a   : > { %1180 = vmatmul.mubr.f32.gmra.mxu1 %v566_v15  ;;  %928 = vmatprep.mubr.f32.mxu0 %v569_v16  ;;  %v1392_v15 = vld [vmem:[%s2666_s7 + $0x18] sm:$0xff] }
 0x10b   : > { %1185 = vmatprep.mubr.f32.mxu1 %v571_v17  ;;  %v1530_v17 = vadd.f32 %v2938_v9, %v1453_v8 }
 0x10d   : > { %929 = vmatmul.mubr.f32.gmra.mxu0 %v568_v18  ;;  %v1455_v18 = vmul.f32 2.0, %v1391_v10 }
 0x10e   : > { %1186 = vmatmul.mubr.f32.gmra.mxu1 %v570_v19  ;;  %934 = vmatprep.mubr.f32.mxu0 %v573_v20  ;;  %v1393_v19 = vld [vmem:[%s2666_s7 + $0x20] sm:$0xff] }
 0x10f   : > { %1191 = vmatprep.mubr.f32.mxu1 %v575_v21 }
 0x111   : > { %935 = vmatmul.mubr.f32.gmra.mxu0 %v572_v22 }
 0x112   : > { %1192 = vmatmul.mubr.f32.gmra.mxu1 %v574_v23  ;;  %940 = vmatprep.mubr.f32.mxu0 %v577_v24  ;;  %v1531_v23 = vadd.f32 %v2941_v12, %v1454_v11  ;;  %v1456_v24 = vmul.f32 2.0, %v1392_v15  ;;  %v1401_v11 = vld [vmem:[%s2666_s7 + $0x60] sm:$0xff] }
 0x113   : > { %1197 = vmatprep.mubr.f32.mxu1 %v579_v25  ;;  %v1394_v25 = vld [vmem:[%s2666_s7 + $0x28] sm:$0xff] }
 0x115   : > { %941 = vmatmul.mubr.f32.gmra.mxu0 %v576_v26 }
 0x116   : > { %1198 = vmatmul.mubr.f32.gmra.mxu1 %v578_v27  ;;  %946 = vmatprep.mubr.f32.mxu0 %v581_v28  ;;  %v1457_v28 = vmul.f32 2.0, %v1393_v19  ;;  %v1402_v19 = vld [vmem:[%s2666_s7 + $0x68] sm:$0xff] }
 0x117   : > { %1203 = vmatprep.mubr.f32.mxu1 %v583_v29 }
 0x119   : > { %947 = vmatmul.mubr.f32.gmra.mxu0 %v580_v30 }
 0x11a   : > { %1204 = vmatmul.mubr.f32.gmra.mxu1 %v582_v31  ;;  %952 = vmatprep.mubr.f32.mxu0 %v585_v32  ;;  %v1532_v31 = vadd.f32 %v2938_v9, %v1455_v18  ;;  %v1464_v18 = vmul.f32 2.0, %v1400_v6 }
 0x11b   : > { %1209 = vmatprep.mubr.f32.mxu1 %v587_v33 }
 0x11d   : > { %953 = vmatmul.mubr.f32.gmra.mxu0 %v584_v34  ;;  %v1458_v34 = vmul.f32 2.0, %v1394_v25 }
 0x11e   : > { %1210 = vmatmul.mubr.f32.gmra.mxu1 %v586_v35  ;;  %958 = vmatprep.mubr.f32.mxu0 %v589_v36  ;;  %v1395_v35 = vld [vmem:[%s2666_s7 + $0x30] sm:$0xff] }
 0x11f   : > { %1215 = vmatprep.mubr.f32.mxu1 %v591_v37 }
 0x121   : > { %959 = vmatmul.mubr.f32.gmra.mxu0 %v588_v38  ;;  %v1533_v38 = vadd.f32 %v2941_v12, %v1456_v24 }
 0x122   : > { %1216 = vmatmul.mubr.f32.gmra.mxu1 %v590_v39  ;;  %964 = vmatprep.mubr.f32.mxu0 %v593_v40 }
 0x123   : > { %1221 = vmatprep.mubr.f32.mxu1 %v595_v41  ;;  %v1534_v41 = vadd.f32 %v2938_v9, %v1457_v28  ;;  %v1466_v28 = vmul.f32 2.0, %v1402_v19 }
 0x125   : > { %965 = vmatmul.mubr.f32.gmra.mxu0 %v592_v42  ;;  %v1396_v42 = vld [vmem:[%s2666_s7 + $0x38] sm:$0xff] }
 0x126   : > { %1222 = vmatmul.mubr.f32.gmra.mxu1 %v594_v43  ;;  %970 = vmatprep.mubr.f32.mxu0 %v597_v44 }
 0x127   : > { %1227 = vmatprep.mubr.f32.mxu1 %v599_v45  ;;  %v1459_v45 = vmul.f32 2.0, %v1395_v35 }
 0x129   : > { %971 = vmatmul.mubr.f32.gmra.mxu0 %v596_v46  ;;  %v1397_v46 = vld [vmem:[%s2666_s7 + $0x40] sm:$0xff] }
 0x12a   : > { %1228 = vmatmul.mubr.f32.gmra.mxu1 %v598_v47  ;;  %976 = vmatprep.mubr.f32.mxu0 %v601_v48 }
 0x12b   : > { %1233 = vmatprep.mubr.f32.mxu1 %v603_v49  ;;  %v1535_v49 = vadd.f32 %v2941_v12, %v1458_v34 }
 0x12d   : > { %977 = vmatmul.mubr.f32.gmra.mxu0 %v600_v50 }
 0x12e   : > { %1234 = vmatmul.mubr.f32.gmra.mxu1 %v602_v51  ;;  %982 = vmatprep.mubr.f32.mxu0 %v605_v52  ;;  %v1460_v52 = vmul.f32 2.0, %v1396_v42 }
 0x12f   : > { %1239 = vmatprep.mubr.f32.mxu1 %v607_v53  ;;  %v1398_v53 = vld [vmem:[%s2666_s7 + $0x48] sm:$0xff] }
 0x130   : > { %v1537_v2 = vadd.f32 %v2941_v12, %v1460_v52 }
 0x131   : > { %983 = vmatmul.mubr.f32.gmra.mxu0 %v604_v54 }
 0x132   : > { %1240 = vmatmul.mubr.f32.gmra.mxu1 %v606_v55  ;;  %988 = vmatprep.mubr.f32.mxu0 %v609_v56  ;;  %v1461_v56 = vmul.f32 2.0, %v1397_v46 }
 0x133   : > { %1245 = vmatprep.mubr.f32.mxu1 %v611_v57 }
 0x134   : > { %v1538_v5 = vadd.f32 %v2938_v9, %v1461_v56 }
 0x135   : > { %989 = vmatmul.mubr.f32.gmra.mxu0 %v608_v58 }
 0x136   : > { %1246 = vmatmul.mubr.f32.gmra.mxu1 %v610_v59  ;;  %994 = vmatprep.mubr.f32.mxu0 %v613_v60  ;;  %v1536_v59 = vadd.f32 %v2938_v9, %v1459_v45 }
 0x137   : > { %1251 = vmatprep.mubr.f32.mxu1 %v615_v61 }
 0x139   : > { %995 = vmatmul.mubr.f32.gmra.mxu0 %v612_v62  ;;  %v1462_v62 = vmul.f32 2.0, %v1398_v53 }
 0x13a   : > { %1252 = vmatmul.mubr.f32.gmra.mxu1 %v614_v63  ;;  %v1399_v63 = vld [vmem:[%s2666_s7 + $0x50] sm:$0xff] }
 0x13b   : > { %v1463_v10 = vmul.f32 2.0, %v1399_v63  ;;  %v1539_v15 = vadd.f32 %v2941_v12, %v1462_v62 }
 0x13d   : > { %v1540_v25 = vadd.f32 %v2938_v9, %v1463_v10 }
 0x17d   : > { %v810_v13 = vpop.f32.mrf.mxu0 }
 0x17e   : > { %v1067_v14 = vpop.f32.mrf.mxu1 }
 0x17f   : > { %v1068_v16 = vadd.f32 %v1067_v14, %v810_v13  ;;  %v812_v20 = vpop.f32.mrf.mxu0 }
 0x180   : > { %v1069_v21 = vpop.f32.mrf.mxu1 }
 0x181   : > { %v1070_v22 = vadd.f32 %v1069_v21, %v812_v20  ;;  %v816_v26 = vpop.f32.mrf.mxu0  ;;  %v1658_v29 = vmul.f32 %v1530_v17, %v1068_v16 }
 0x182   : > { %v1073_v27 = vpop.f32.mrf.mxu1 }
 0x183   : > { %v1074_v30 = vadd.f32 %v1073_v27, %v816_v26  ;;  %v818_v32 = vpop.f32.mrf.mxu0  ;;  %1722 = vst [vmem:[%s2951_s20] sm:$0xff] %v1658_v29  ;;  %v1659_v36 = vmul.f32 %v1531_v23, %v1070_v22  ;;  %v1465_v22 = vmul.f32 2.0, %v1401_v11  ;;  %v1403_v29 = vld [vmem:[%s2666_s7 + $0x70] sm:$0xff] }
 0x184   : > { %v1075_v33 = vpop.f32.mrf.mxu1 }
 0x185   : > { %v1076_v37 = vadd.f32 %v1075_v33, %v818_v32  ;;  %v822_v39 = vpop.f32.mrf.mxu0  ;;  %1723 = vst [vmem:[%s2951_s20 + $0x8] sm:$0xff] %v1659_v36  ;;  %v1660_v43 = vmul.f32 %v1532_v31, %v1074_v30  ;;  %v1541_v32 = vadd.f32 %v2941_v12, %v1464_v18  ;;  %v1542_v35 = vadd.f32 %v2938_v9, %v1465_v22  ;;  %v1404_v36 = vld [vmem:[%s2666_s7 + $0x78] sm:$0xff] }
 0x186   : > { %v1079_v40 = vpop.f32.mrf.mxu1  ;;  %v1468_v46 = vmul.f32 2.0, %v1404_v36 }
 0x187   : > { %v1080_v44 = vadd.f32 %v1079_v40, %v822_v39  ;;  %v824_v47 = vpop.f32.mrf.mxu0  ;;  %1724 = vst [vmem:[%s2951_s20 + $0x10] sm:$0xff] %v1660_v43  ;;  %v1661_v50 = vmul.f32 %v1533_v38, %v1076_v37  ;;  %v1467_v39 = vmul.f32 2.0, %v1403_v29  ;;  %v1405_v40 = vld [vmem:[%s2666_s7 + $0x80] sm:$0xff]  ;;  %v1543_v43 = vadd.f32 %v2941_v12, %v1466_v28 }
 0x188   : > { %v1081_v48 = vpop.f32.mrf.mxu1 }
 0x189   : > { %v1082_v51 = vadd.f32 %v1081_v48, %v824_v47  ;;  %v828_v54 = vpop.f32.mrf.mxu0  ;;  %1725 = vst [vmem:[%s2951_s20 + $0x18] sm:$0xff] %v1661_v50  ;;  %v1662_v57 = vmul.f32 %v1534_v41, %v1080_v44  ;;  %v1406_v47 = vld [vmem:[%s2666_s7 + $0x88] sm:$0xff]  ;;  %v1469_v50 = vmul.f32 2.0, %v1405_v40  ;;  %v1544_v53 = vadd.f32 %v2938_v9, %v1467_v39 }
 0x18a   : > { %v1085_v55 = vpop.f32.mrf.mxu1  ;;  %v1470_v56 = vmul.f32 2.0, %v1406_v47 }
 0x18b   : > { %v1086_v58 = vadd.f32 %v1085_v55, %v828_v54  ;;  %v830_v60 = vpop.f32.mrf.mxu0  ;;  %1726 = vst [vmem:[%s2951_s20 + $0x20] sm:$0xff] %v1662_v57  ;;  %v1663_v0 = vmul.f32 %v1535_v49, %v1082_v51  ;;  %v1407_v57 = vld [vmem:[%s2666_s7 + $0x90] sm:$0xff]  ;;  %v1546_v63 = vadd.f32 %v2938_v9, %v1469_v50 }
 0x18c   : > { %v1087_v61 = vpop.f32.mrf.mxu1 }
 0x18d   : > { %v1088_v1 = vadd.f32 %v1087_v61, %v830_v60  ;;  %v834_v3 = vpop.f32.mrf.mxu0  ;;  %1727 = vst [vmem:[%s2951_s20 + $0x28] sm:$0xff] %v1663_v0  ;;  %v1664_v7 = vmul.f32 %v1536_v59, %v1086_v58  ;;  %v1545_v60 = vadd.f32 %v2941_v12, %v1468_v46  ;;  %v1408_v0 = vld [vmem:[%s2666_s7 + $0x98] sm:$0xff] }
 0x18e   : > { %v1091_v4 = vpop.f32.mrf.mxu1  ;;  %v1472_v11 = vmul.f32 2.0, %v1408_v0 }
 0x18f   : > { %v1092_v8 = vadd.f32 %v1091_v4, %v834_v3  ;;  %v836_v13 = vpop.f32.mrf.mxu0  ;;  %1728 = vst [vmem:[%s2951_s20 + $0x30] sm:$0xff] %v1664_v7  ;;  %v1665_v16 = vmul.f32 %v1537_v2, %v1088_v1  ;;  %v1471_v3 = vmul.f32 2.0, %v1407_v57  ;;  %v1409_v4 = vld [vmem:[%s2666_s7 + $0xa0] sm:$0xff]  ;;  %v1547_v7 = vadd.f32 %v2941_v12, %v1470_v56 }
 0x190   : > { %v1093_v14 = vpop.f32.mrf.mxu1 }
 0x191   : > { %v1094_v17 = vadd.f32 %v1093_v14, %v836_v13  ;;  %v840_v20 = vpop.f32.mrf.mxu0  ;;  %1729 = vst [vmem:[%s2951_s20 + $0x38] sm:$0xff] %v1665_v16  ;;  %v1666_v23 = vmul.f32 %v1538_v5, %v1092_v8  ;;  %v1410_v13 = vld [vmem:[%s2666_s7 + $0xa8] sm:$0xff]  ;;  %v1473_v16 = vmul.f32 2.0, %v1409_v4  ;;  %v1548_v19 = vadd.f32 %v2938_v9, %v1471_v3 }
 0x192   : > { %v1097_v21 = vpop.f32.mrf.mxu1  ;;  %v1474_v22 = vmul.f32 2.0, %v1410_v13 }
 0x193   : > { %v1098_v24 = vadd.f32 %v1097_v21, %v840_v20  ;;  %v842_v26 = vpop.f32.mrf.mxu0  ;;  %1730 = vst [vmem:[%s2951_s20 + $0x40] sm:$0xff] %v1666_v23  ;;  %v1667_v30 = vmul.f32 %v1539_v15, %v1094_v17  ;;  %v1411_v23 = vld [vmem:[%s2666_s7 + $0xb0] sm:$0xff]  ;;  %v1550_v29 = vadd.f32 %v2938_v9, %v1473_v16 }
 0x194   : > { %v1099_v27 = vpop.f32.mrf.mxu1 }
 0x195   : > { %v1100_v31 = vadd.f32 %v1099_v27, %v842_v26  ;;  %v846_v33 = vpop.f32.mrf.mxu0  ;;  %1731 = vst [vmem:[%s2951_s20 + $0x48] sm:$0xff] %v1667_v30  ;;  %v1668_v37 = vmul.f32 %v1540_v25, %v1098_v24  ;;  %v1549_v26 = vadd.f32 %v2941_v12, %v1472_v11  ;;  %v1412_v30 = vld [vmem:[%s2666_s7 + $0xb8] sm:$0xff] }
 0x196   : > { %v1103_v34 = vpop.f32.mrf.mxu1  ;;  %v1476_v40 = vmul.f32 2.0, %v1412_v30 }
 0x197   : > { %v1104_v38 = vadd.f32 %v1103_v34, %v846_v33  ;;  %v848_v41 = vpop.f32.mrf.mxu0  ;;  %1732 = vst [vmem:[%s2951_s20 + $0x50] sm:$0xff] %v1668_v37  ;;  %v1669_v44 = vmul.f32 %v1541_v32, %v1100_v31  ;;  %v1475_v33 = vmul.f32 2.0, %v1411_v23  ;;  %v1413_v34 = vld [vmem:[%s2666_s7 + $0xc0] sm:$0xff]  ;;  %v1551_v37 = vadd.f32 %v2941_v12, %v1474_v22 }
 0x198   : > { %v1105_v42 = vpop.f32.mrf.mxu1 }
 0x199   : > { %v1106_v45 = vadd.f32 %v1105_v42, %v848_v41  ;;  %v852_v48 = vpop.f32.mrf.mxu0  ;;  %1733 = vst [vmem:[%s2951_s20 + $0x58] sm:$0xff] %v1669_v44  ;;  %v1670_v51 = vmul.f32 %v1542_v35, %v1104_v38  ;;  %v1414_v41 = vld [vmem:[%s2666_s7 + $0xc8] sm:$0xff]  ;;  %v1477_v44 = vmul.f32 2.0, %v1413_v34  ;;  %v1552_v47 = vadd.f32 %v2938_v9, %v1475_v33 }
 0x19a   : > { %v1109_v49 = vpop.f32.mrf.mxu1  ;;  %v1478_v50 = vmul.f32 2.0, %v1414_v41 }
 0x19b   : > { %v1110_v52 = vadd.f32 %v1109_v49, %v852_v48  ;;  %v854_v54 = vpop.f32.mrf.mxu0  ;;  %1734 = vst [vmem:[%s2951_s20 + $0x60] sm:$0xff] %v1670_v51  ;;  %v1671_v58 = vmul.f32 %v1543_v43, %v1106_v45  ;;  %v1415_v51 = vld [vmem:[%s2666_s7 + $0xd0] sm:$0xff]  ;;  %v1554_v57 = vadd.f32 %v2938_v9, %v1477_v44 }
 0x19c   : > { %v1111_v55 = vpop.f32.mrf.mxu1 }
 0x19d   : > { %v1112_v59 = vadd.f32 %v1111_v55, %v854_v54  ;;  %v858_v61 = vpop.f32.mrf.mxu0  ;;  %1735 = vst [vmem:[%s2951_s20 + $0x68] sm:$0xff] %v1671_v58  ;;  %v1672_v1 = vmul.f32 %v1544_v53, %v1110_v52  ;;  %v1553_v54 = vadd.f32 %v2941_v12, %v1476_v40  ;;  %v1416_v58 = vld [vmem:[%s2666_s7 + $0xd8] sm:$0xff] }
 0x19e   : > { %v1115_v62 = vpop.f32.mrf.mxu1  ;;  %v1480_v4 = vmul.f32 2.0, %v1416_v58 }
 0x19f   : > { %v1116_v2 = vadd.f32 %v1115_v62, %v858_v61  ;;  %v860_v5 = vpop.f32.mrf.mxu0  ;;  %1736 = vst [vmem:[%s2951_s20 + $0x70] sm:$0xff] %v1672_v1  ;;  %v1673_v8 = vmul.f32 %v1545_v60, %v1112_v59  ;;  %v1479_v61 = vmul.f32 2.0, %v1415_v51  ;;  %v1417_v62 = vld [vmem:[%s2666_s7 + $0xe0] sm:$0xff]  ;;  %v1555_v1 = vadd.f32 %v2941_v12, %v1478_v50 }
 0x1a0   : > { %v1117_v6 = vpop.f32.mrf.mxu1 }
 0x1a1   : > { %v1118_v10 = vadd.f32 %v1117_v6, %v860_v5  ;;  %v864_v14 = vpop.f32.mrf.mxu0  ;;  %1737 = vst [vmem:[%s2951_s20 + $0x78] sm:$0xff] %v1673_v8  ;;  %v1674_v17 = vmul.f32 %v1546_v63, %v1116_v2  ;;  %v1418_v5 = vld [vmem:[%s2666_s7 + $0xe8] sm:$0xff]  ;;  %v1481_v8 = vmul.f32 2.0, %v1417_v62  ;;  %v1556_v13 = vadd.f32 %v2938_v9, %v1479_v61 }
 0x1a2   : > { %v1121_v15 = vpop.f32.mrf.mxu1  ;;  %v1482_v16 = vmul.f32 2.0, %v1418_v5 }
 0x1a3   : > { %v1122_v18 = vadd.f32 %v1121_v15, %v864_v14  ;;  %v866_v20 = vpop.f32.mrf.mxu0  ;;  %1738 = vst [vmem:[%s2951_s20 + $0x80] sm:$0xff] %v1674_v17  ;;  %v1675_v24 = vmul.f32 %v1547_v7, %v1118_v10  ;;  %v1419_v17 = vld [vmem:[%s2666_s7 + $0xf0] sm:$0xff]  ;;  %v1558_v23 = vadd.f32 %v2938_v9, %v1481_v8 }
 0x1a4   : > { %v1123_v21 = vpop.f32.mrf.mxu1 }
 0x1a5   : > { %v1124_v25 = vadd.f32 %v1123_v21, %v866_v20  ;;  %v870_v27 = vpop.f32.mrf.mxu0  ;;  %1739 = vst [vmem:[%s2951_s20 + $0x88] sm:$0xff] %v1675_v24  ;;  %v1676_v31 = vmul.f32 %v1548_v19, %v1122_v18  ;;  %v1557_v20 = vadd.f32 %v2941_v12, %v1480_v4  ;;  %v1420_v24 = vld [vmem:[%s2666_s7 + $0xf8] sm:$0xff] }
 0x1a6   : > { %v1127_v28 = vpop.f32.mrf.mxu1  ;;  %v1484_v34 = vmul.f32 2.0, %v1420_v24 }
 0x1a7   : > { %v1128_v32 = vadd.f32 %v1127_v28, %v870_v27  ;;  %v872_v35 = vpop.f32.mrf.mxu0  ;;  %1740 = vst [vmem:[%s2951_s20 + $0x90] sm:$0xff] %v1676_v31  ;;  %v1677_v38 = vmul.f32 %v1549_v26, %v1124_v25  ;;  %v1483_v27 = vmul.f32 2.0, %v1419_v17  ;;  %v1421_v28 = vld [vmem:[%s2666_s7 + $0x100] sm:$0xff]  ;;  %v1559_v31 = vadd.f32 %v2941_v12, %v1482_v16 }
 0x1a8   : > { %v1129_v36 = vpop.f32.mrf.mxu1 }
 0x1a9   : > { %v1130_v39 = vadd.f32 %v1129_v36, %v872_v35  ;;  %v876_v42 = vpop.f32.mrf.mxu0  ;;  %1741 = vst [vmem:[%s2951_s20 + $0x98] sm:$0xff] %v1677_v38  ;;  %v1678_v45 = vmul.f32 %v1550_v29, %v1128_v32  ;;  %v1422_v35 = vld [vmem:[%s2666_s7 + $0x108] sm:$0xff]  ;;  %v1485_v38 = vmul.f32 2.0, %v1421_v28  ;;  %v1560_v41 = vadd.f32 %v2938_v9, %v1483_v27 }
 0x1aa   : > { %v1133_v43 = vpop.f32.mrf.mxu1  ;;  %v1486_v44 = vmul.f32 2.0, %v1422_v35 }
 0x1ab   : > { %v1134_v46 = vadd.f32 %v1133_v43, %v876_v42  ;;  %v878_v48 = vpop.f32.mrf.mxu0  ;;  %1742 = vst [vmem:[%s2951_s20 + $0xa0] sm:$0xff] %v1678_v45  ;;  %v1679_v52 = vmul.f32 %v1551_v37, %v1130_v39  ;;  %v1423_v45 = vld [vmem:[%s2666_s7 + $0x110] sm:$0xff]  ;;  %v1562_v51 = vadd.f32 %v2938_v9, %v1485_v38 }
 0x1ac   : > { %v1135_v49 = vpop.f32.mrf.mxu1 }
 0x1ad   : > { %v1136_v53 = vadd.f32 %v1135_v49, %v878_v48  ;;  %v882_v55 = vpop.f32.mrf.mxu0  ;;  %1743 = vst [vmem:[%s2951_s20 + $0xa8] sm:$0xff] %v1679_v52  ;;  %v1680_v59 = vmul.f32 %v1552_v47, %v1134_v46  ;;  %v1561_v48 = vadd.f32 %v2941_v12, %v1484_v34  ;;  %v1424_v52 = vld [vmem:[%s2666_s7 + $0x118] sm:$0xff] }
 0x1ae   : > { %v1139_v56 = vpop.f32.mrf.mxu1  ;;  %v1488_v62 = vmul.f32 2.0, %v1424_v52 }
 0x1af   : > { %v1140_v60 = vadd.f32 %v1139_v56, %v882_v55  ;;  %v884_v63 = vpop.f32.mrf.mxu0  ;;  %1744 = vst [vmem:[%s2951_s20 + $0xb0] sm:$0xff] %v1680_v59  ;;  %v1681_v2 = vmul.f32 %v1553_v54, %v1136_v53  ;;  %v1487_v55 = vmul.f32 2.0, %v1423_v45  ;;  %v1425_v56 = vld [vmem:[%s2666_s7 + $0x120] sm:$0xff]  ;;  %v1563_v59 = vadd.f32 %v2941_v12, %v1486_v44 }
 0x1b0   : > { %v1141_v0 = vpop.f32.mrf.mxu1 }
 0x1b1   : > { %v1142_v3 = vadd.f32 %v1141_v0, %v884_v63  ;;  %v888_v6 = vpop.f32.mrf.mxu0  ;;  %1745 = vst [vmem:[%s2951_s20 + $0xb8] sm:$0xff] %v1681_v2  ;;  %v1682_v10 = vmul.f32 %v1554_v57, %v1140_v60  ;;  %v1426_v63 = vld [vmem:[%s2666_s7 + $0x128] sm:$0xff]  ;;  %v1489_v2 = vmul.f32 2.0, %v1425_v56  ;;  %v1564_v5 = vadd.f32 %v2938_v9, %v1487_v55 }
 0x1b2   : > { %v1145_v7 = vpop.f32.mrf.mxu1  ;;  %v1490_v8 = vmul.f32 2.0, %v1426_v63 }
 0x1b3   : > { %v1146_v11 = vadd.f32 %v1145_v7, %v888_v6  ;;  %v890_v14 = vpop.f32.mrf.mxu0  ;;  %1746 = vst [vmem:[%s2951_s20 + $0xc0] sm:$0xff] %v1682_v10  ;;  %v1683_v18 = vmul.f32 %v1555_v1, %v1142_v3  ;;  %v1427_v10 = vld [vmem:[%s2666_s7 + $0x130] sm:$0xff]  ;;  %v1566_v17 = vadd.f32 %v2938_v9, %v1489_v2 }
 0x1b4   : > { %v1147_v15 = vpop.f32.mrf.mxu1 }
 0x1b5   : > { %v1148_v19 = vadd.f32 %v1147_v15, %v890_v14  ;;  %v894_v21 = vpop.f32.mrf.mxu0  ;;  %1747 = vst [vmem:[%s2951_s20 + $0xc8] sm:$0xff] %v1683_v18  ;;  %v1684_v25 = vmul.f32 %v1556_v13, %v1146_v11  ;;  %v1565_v14 = vadd.f32 %v2941_v12, %v1488_v62  ;;  %v1428_v18 = vld [vmem:[%s2666_s7 + $0x138] sm:$0xff] }
 0x1b6   : > { %v1151_v22 = vpop.f32.mrf.mxu1  ;;  %v1492_v28 = vmul.f32 2.0, %v1428_v18 }
 0x1b7   : > { %v1152_v26 = vadd.f32 %v1151_v22, %v894_v21  ;;  %v896_v29 = vpop.f32.mrf.mxu0  ;;  %1748 = vst [vmem:[%s2951_s20 + $0xd0] sm:$0xff] %v1684_v25  ;;  %v1685_v32 = vmul.f32 %v1557_v20, %v1148_v19  ;;  %v1491_v21 = vmul.f32 2.0, %v1427_v10  ;;  %v1429_v22 = vld [vmem:[%s2666_s7 + $0x140] sm:$0xff]  ;;  %v1567_v25 = vadd.f32 %v2941_v12, %v1490_v8 }
 0x1b8   : > { %v1153_v30 = vpop.f32.mrf.mxu1 }
 0x1b9   : > { %v1154_v33 = vadd.f32 %v1153_v30, %v896_v29  ;;  %v900_v36 = vpop.f32.mrf.mxu0  ;;  %1749 = vst [vmem:[%s2951_s20 + $0xd8] sm:$0xff] %v1685_v32  ;;  %v1686_v39 = vmul.f32 %v1558_v23, %v1152_v26  ;;  %v1430_v29 = vld [vmem:[%s2666_s7 + $0x148] sm:$0xff]  ;;  %v1493_v32 = vmul.f32 2.0, %v1429_v22  ;;  %v1568_v35 = vadd.f32 %v2938_v9, %v1491_v21 }
 0x1ba   : > { %v1157_v37 = vpop.f32.mrf.mxu1  ;;  %v1494_v38 = vmul.f32 2.0, %v1430_v29 }
 0x1bb   : > { %v1158_v40 = vadd.f32 %v1157_v37, %v900_v36  ;;  %v902_v42 = vpop.f32.mrf.mxu0  ;;  %1750 = vst [vmem:[%s2951_s20 + $0xe0] sm:$0xff] %v1686_v39  ;;  %v1687_v46 = vmul.f32 %v1559_v31, %v1154_v33  ;;  %v1431_v39 = vld [vmem:[%s2666_s7 + $0x150] sm:$0xff]  ;;  %v1570_v45 = vadd.f32 %v2938_v9, %v1493_v32 }
 0x1bc   : > { %v1159_v43 = vpop.f32.mrf.mxu1 }
 0x1bd   : > { %v1160_v47 = vadd.f32 %v1159_v43, %v902_v42  ;;  %v906_v49 = vpop.f32.mrf.mxu0  ;;  %1751 = vst [vmem:[%s2951_s20 + $0xe8] sm:$0xff] %v1687_v46  ;;  %v1688_v53 = vmul.f32 %v1560_v41, %v1158_v40  ;;  %v1569_v42 = vadd.f32 %v2941_v12, %v1492_v28  ;;  %v1432_v46 = vld [vmem:[%s2666_s7 + $0x158] sm:$0xff] }
 0x1be   : > { %v1163_v50 = vpop.f32.mrf.mxu1  ;;  %v1496_v56 = vmul.f32 2.0, %v1432_v46 }
 0x1bf   : > { %v1164_v54 = vadd.f32 %v1163_v50, %v906_v49  ;;  %v908_v57 = vpop.f32.mrf.mxu0  ;;  %1752 = vst [vmem:[%s2951_s20 + $0xf0] sm:$0xff] %v1688_v53  ;;  %v1689_v60 = vmul.f32 %v1561_v48, %v1160_v47  ;;  %v1495_v49 = vmul.f32 2.0, %v1431_v39  ;;  %v1433_v50 = vld [vmem:[%s2666_s7 + $0x160] sm:$0xff]  ;;  %v1571_v53 = vadd.f32 %v2941_v12, %v1494_v38 }
 0x1c0   : > { %v1165_v58 = vpop.f32.mrf.mxu1 }
 0x1c1   : > { %v1166_v61 = vadd.f32 %v1165_v58, %v908_v57  ;;  %v912_v0 = vpop.f32.mrf.mxu0  ;;  %1753 = vst [vmem:[%s2951_s20 + $0xf8] sm:$0xff] %v1689_v60  ;;  %v1690_v3 = vmul.f32 %v1562_v51, %v1164_v54  ;;  %v1434_v57 = vld [vmem:[%s2666_s7 + $0x168] sm:$0xff]  ;;  %v1497_v60 = vmul.f32 2.0, %v1433_v50  ;;  %v1572_v63 = vadd.f32 %v2938_v9, %v1495_v49 }
 0x1c2   : > { %v1169_v1 = vpop.f32.mrf.mxu1  ;;  %v1498_v2 = vmul.f32 2.0, %v1434_v57 }
 0x1c3   : > { %v1170_v4 = vadd.f32 %v1169_v1, %v912_v0  ;;  %v914_v6 = vpop.f32.mrf.mxu0  ;;  %1754 = vst [vmem:[%s2951_s20 + $0x100] sm:$0xff] %v1690_v3  ;;  %v1691_v11 = vmul.f32 %v1563_v59, %v1166_v61  ;;  %v1435_v3 = vld [vmem:[%s2666_s7 + $0x170] sm:$0xff]  ;;  %v1574_v10 = vadd.f32 %v2938_v9, %v1497_v60 }
 0x1c4   : > { %v1171_v7 = vpop.f32.mrf.mxu1 }
 0x1c5   : > { %v1172_v13 = vadd.f32 %v1171_v7, %v914_v6  ;;  %v918_v15 = vpop.f32.mrf.mxu0  ;;  %1755 = vst [vmem:[%s2951_s20 + $0x108] sm:$0xff] %v1691_v11  ;;  %v1692_v19 = vmul.f32 %v1564_v5, %v1170_v4  ;;  %v1573_v6 = vadd.f32 %v2941_v12, %v1496_v56  ;;  %v1436_v11 = vld [vmem:[%s2666_s7 + $0x178] sm:$0xff] }
 0x1c6   : > { %v1175_v16 = vpop.f32.mrf.mxu1  ;;  %v1500_v22 = vmul.f32 2.0, %v1436_v11 }
 0x1c7   : > { %v1176_v20 = vadd.f32 %v1175_v16, %v918_v15  ;;  %v920_v23 = vpop.f32.mrf.mxu0  ;;  %1756 = vst [vmem:[%s2951_s20 + $0x110] sm:$0xff] %v1692_v19  ;;  %v1693_v26 = vmul.f32 %v1565_v14, %v1172_v13  ;;  %v1499_v15 = vmul.f32 2.0, %v1435_v3  ;;  %v1437_v16 = vld [vmem:[%s2666_s7 + $0x180] sm:$0xff]  ;;  %v1575_v19 = vadd.f32 %v2941_v12, %v1498_v2 }
 0x1c8   : > { %v1177_v24 = vpop.f32.mrf.mxu1 }
 0x1c9   : > { %v1178_v27 = vadd.f32 %v1177_v24, %v920_v23  ;;  %v924_v30 = vpop.f32.mrf.mxu0  ;;  %1757 = vst [vmem:[%s2951_s20 + $0x118] sm:$0xff] %v1693_v26  ;;  %v1694_v33 = vmul.f32 %v1566_v17, %v1176_v20  ;;  %v1438_v23 = vld [vmem:[%s2666_s7 + $0x188] sm:$0xff]  ;;  %v1501_v26 = vmul.f32 2.0, %v1437_v16  ;;  %v1576_v29 = vadd.f32 %v2938_v9, %v1499_v15 }
 0x1ca   : > { %v1181_v31 = vpop.f32.mrf.mxu1  ;;  %v1502_v32 = vmul.f32 2.0, %v1438_v23 }
 0x1cb   : > { %v1182_v34 = vadd.f32 %v1181_v31, %v924_v30  ;;  %v926_v36 = vpop.f32.mrf.mxu0  ;;  %1758 = vst [vmem:[%s2951_s20 + $0x120] sm:$0xff] %v1694_v33  ;;  %v1695_v40 = vmul.f32 %v1567_v25, %v1178_v27  ;;  %v1439_v33 = vld [vmem:[%s2666_s7 + $0x190] sm:$0xff]  ;;  %v1578_v39 = vadd.f32 %v2938_v9, %v1501_v26 }
 0x1cc   : > { %v1183_v37 = vpop.f32.mrf.mxu1 }
 0x1cd   : > { %v1184_v41 = vadd.f32 %v1183_v37, %v926_v36  ;;  %v930_v43 = vpop.f32.mrf.mxu0  ;;  %1759 = vst [vmem:[%s2951_s20 + $0x128] sm:$0xff] %v1695_v40  ;;  %v1696_v47 = vmul.f32 %v1568_v35, %v1182_v34  ;;  %v1577_v36 = vadd.f32 %v2941_v12, %v1500_v22  ;;  %v1440_v40 = vld [vmem:[%s2666_s7 + $0x198] sm:$0xff] }
 0x1ce   : > { %v1187_v44 = vpop.f32.mrf.mxu1  ;;  %v1504_v50 = vmul.f32 2.0, %v1440_v40 }
 0x1cf   : > { %v1188_v48 = vadd.f32 %v1187_v44, %v930_v43  ;;  %v932_v51 = vpop.f32.mrf.mxu0  ;;  %1760 = vst [vmem:[%s2951_s20 + $0x130] sm:$0xff] %v1696_v47  ;;  %v1697_v54 = vmul.f32 %v1569_v42, %v1184_v41  ;;  %v1503_v43 = vmul.f32 2.0, %v1439_v33  ;;  %v1441_v44 = vld [vmem:[%s2666_s7 + $0x1a0] sm:$0xff]  ;;  %v1579_v47 = vadd.f32 %v2941_v12, %v1502_v32 }
 0x1d0   : > { %v1189_v52 = vpop.f32.mrf.mxu1 }
 0x1d1   : > { %v1190_v55 = vadd.f32 %v1189_v52, %v932_v51  ;;  %v936_v58 = vpop.f32.mrf.mxu0  ;;  %1761 = vst [vmem:[%s2951_s20 + $0x138] sm:$0xff] %v1697_v54  ;;  %v1698_v61 = vmul.f32 %v1570_v45, %v1188_v48  ;;  %v1442_v51 = vld [vmem:[%s2666_s7 + $0x1a8] sm:$0xff]  ;;  %v1505_v54 = vmul.f32 2.0, %v1441_v44  ;;  %v1580_v57 = vadd.f32 %v2938_v9, %v1503_v43 }
 0x1d2   : > { %v1193_v59 = vpop.f32.mrf.mxu1  ;;  %v1506_v60 = vmul.f32 2.0, %v1442_v51 }
 0x1d3   : > { %v1194_v62 = vadd.f32 %v1193_v59, %v936_v58  ;;  %v938_v0 = vpop.f32.mrf.mxu0  ;;  %1762 = vst [vmem:[%s2951_s20 + $0x140] sm:$0xff] %v1698_v61  ;;  %v1699_v4 = vmul.f32 %v1571_v53, %v1190_v55  ;;  %v1443_v61 = vld [vmem:[%s2666_s7 + $0x1b0] sm:$0xff]  ;;  %v1582_v3 = vadd.f32 %v2938_v9, %v1505_v54 }
 0x1d4   : > { %v1195_v1 = vpop.f32.mrf.mxu1 }
 0x1d5   : > { %v1196_v5 = vadd.f32 %v1195_v1, %v938_v0  ;;  %v942_v7 = vpop.f32.mrf.mxu0  ;;  %1763 = vst [vmem:[%s2951_s20 + $0x148] sm:$0xff] %v1699_v4  ;;  %v1700_v13 = vmul.f32 %v1572_v63, %v1194_v62  ;;  %v1581_v0 = vadd.f32 %v2941_v12, %v1504_v50  ;;  %v1444_v4 = vld [vmem:[%s2666_s7 + $0x1b8] sm:$0xff] }
 0x1d6   : > { %v1199_v8 = vpop.f32.mrf.mxu1  ;;  %v1508_v16 = vmul.f32 2.0, %v1444_v4 }
 0x1d7   : > { %v1200_v14 = vadd.f32 %v1199_v8, %v942_v7  ;;  %v944_v17 = vpop.f32.mrf.mxu0  ;;  %1764 = vst [vmem:[%s2951_s20 + $0x150] sm:$0xff] %v1700_v13  ;;  %v1701_v20 = vmul.f32 %v1573_v6, %v1196_v5  ;;  %v1507_v7 = vmul.f32 2.0, %v1443_v61  ;;  %v1445_v8 = vld [vmem:[%s2666_s7 + $0x1c0] sm:$0xff]  ;;  %v1583_v13 = vadd.f32 %v2941_v12, %v1506_v60 }
 0x1d8   : > { %v1201_v18 = vpop.f32.mrf.mxu1 }
 0x1d9   : > { %v1202_v21 = vadd.f32 %v1201_v18, %v944_v17  ;;  %v948_v24 = vpop.f32.mrf.mxu0  ;;  %1765 = vst [vmem:[%s2951_s20 + $0x158] sm:$0xff] %v1701_v20  ;;  %v1702_v27 = vmul.f32 %v1574_v10, %v1200_v14  ;;  %v1446_v17 = vld [vmem:[%s2666_s7 + $0x1c8] sm:$0xff]  ;;  %v1509_v20 = vmul.f32 2.0, %v1445_v8  ;;  %v1584_v23 = vadd.f32 %v2938_v9, %v1507_v7 }
 0x1da   : > { %v1205_v25 = vpop.f32.mrf.mxu1  ;;  %v1510_v26 = vmul.f32 2.0, %v1446_v17 }
 0x1db   : > { %v1206_v28 = vadd.f32 %v1205_v25, %v948_v24  ;;  %v950_v30 = vpop.f32.mrf.mxu0  ;;  %1766 = vst [vmem:[%s2951_s20 + $0x160] sm:$0xff] %v1702_v27  ;;  %v1703_v34 = vmul.f32 %v1575_v19, %v1202_v21  ;;  %v1447_v27 = vld [vmem:[%s2666_s7 + $0x1d0] sm:$0xff]  ;;  %v1586_v33 = vadd.f32 %v2938_v9, %v1509_v20 }
 0x1dc   : > { %v1207_v31 = vpop.f32.mrf.mxu1 }
 0x1dd   : > { %v1208_v35 = vadd.f32 %v1207_v31, %v950_v30  ;;  %v954_v37 = vpop.f32.mrf.mxu0  ;;  %1767 = vst [vmem:[%s2951_s20 + $0x168] sm:$0xff] %v1703_v34  ;;  %v1704_v41 = vmul.f32 %v1576_v29, %v1206_v28  ;;  %v1585_v30 = vadd.f32 %v2941_v12, %v1508_v16  ;;  %v1448_v34 = vld [vmem:[%s2666_s7 + $0x1d8] sm:$0xff] }
 0x1de   : > { %v1211_v38 = vpop.f32.mrf.mxu1  ;;  %v1512_v44 = vmul.f32 2.0, %v1448_v34 }
 0x1df   : > { %v1212_v42 = vadd.f32 %v1211_v38, %v954_v37  ;;  %v956_v45 = vpop.f32.mrf.mxu0  ;;  %1768 = vst [vmem:[%s2951_s20 + $0x170] sm:$0xff] %v1704_v41  ;;  %v1705_v48 = vmul.f32 %v1577_v36, %v1208_v35  ;;  %v1511_v37 = vmul.f32 2.0, %v1447_v27  ;;  %v1449_v38 = vld [vmem:[%s2666_s7 + $0x1e0] sm:$0xff]  ;;  %v1587_v41 = vadd.f32 %v2941_v12, %v1510_v26 }
 0x1e0   : > { %v1213_v46 = vpop.f32.mrf.mxu1 }
 0x1e1   : > { %v1214_v49 = vadd.f32 %v1213_v46, %v956_v45  ;;  %v960_v52 = vpop.f32.mrf.mxu0  ;;  %1769 = vst [vmem:[%s2951_s20 + $0x178] sm:$0xff] %v1705_v48  ;;  %v1706_v55 = vmul.f32 %v1578_v39, %v1212_v42  ;;  %v1450_v45 = vld [vmem:[%s2666_s7 + $0x1e8] sm:$0xff]  ;;  %v1513_v48 = vmul.f32 2.0, %v1449_v38  ;;  %v1588_v51 = vadd.f32 %v2938_v9, %v1511_v37 }
 0x1e2   : > { %v1217_v53 = vpop.f32.mrf.mxu1  ;;  %v1514_v54 = vmul.f32 2.0, %v1450_v45 }
 0x1e3   : > { %v1218_v56 = vadd.f32 %v1217_v53, %v960_v52  ;;  %v962_v58 = vpop.f32.mrf.mxu0  ;;  %1770 = vst [vmem:[%s2951_s20 + $0x180] sm:$0xff] %v1706_v55  ;;  %v1707_v62 = vmul.f32 %v1579_v47, %v1214_v49  ;;  %v1451_v55 = vld [vmem:[%s2666_s7 + $0x1f0] sm:$0xff]  ;;  %v1590_v61 = vadd.f32 %v2938_v9, %v1513_v48 }
 0x1e4   : > { %v1219_v59 = vpop.f32.mrf.mxu1  ;;  %v1591_v4 = vadd.f32 %v2941_v12, %v1514_v54 }
 0x1e5   : > { %v1220_v63 = vadd.f32 %v1219_v59, %v962_v58  ;;  %v966_v1 = vpop.f32.mrf.mxu0  ;;  %1771 = vst [vmem:[%s2951_s20 + $0x188] sm:$0xff] %v1707_v62  ;;  %v1708_v5 = vmul.f32 %v1580_v57, %v1218_v56  ;;  %v1589_v58 = vadd.f32 %v2941_v12, %v1512_v44  ;;  %v1452_v62 = vld [vmem:[%s2666_s7 + $0x1f8] sm:$0xff]  ;;  %s3147_s7 = scalar_lea.sflag [#allocation4], %s302_s9 }
 0x1e6   : > { %v1223_v2 = vpop.f32.mrf.mxu1  ;;  %v1516_v7 = vmul.f32 2.0, %v1452_v62 }
 0x1e7   : > { %v1224_v6 = vadd.f32 %v1223_v2, %v966_v1  ;;  %v968_v10 = vpop.f32.mrf.mxu0  ;;  %1772 = vst [vmem:[%s2951_s20 + $0x190] sm:$0xff] %v1708_v5  ;;  %v1709_v14 = vmul.f32 %v1581_v0, %v1220_v63  ;;  %v1515_v1 = vmul.f32 2.0, %v1451_v55 }
 0x1e8   : > { %v1225_v11 = vpop.f32.mrf.mxu1 }
 0x1e9   : > { %v1226_v15 = vadd.f32 %v1225_v11, %v968_v10  ;;  %v972_v18 = vpop.f32.mrf.mxu0  ;;  %1773 = vst [vmem:[%s2951_s20 + $0x198] sm:$0xff] %v1709_v14  ;;  %v1710_v21 = vmul.f32 %v1582_v3, %v1224_v6  ;;  %v1592_v14 = vadd.f32 %v2938_v9, %v1515_v1 }
 0x1ea   : > { %v1229_v19 = vpop.f32.mrf.mxu1 }
 0x1eb   : > { %v1230_v22 = vadd.f32 %v1229_v19, %v972_v18  ;;  %v974_v24 = vpop.f32.mrf.mxu0  ;;  %1774 = vst [vmem:[%s2951_s20 + $0x1a0] sm:$0xff] %v1710_v21  ;;  %v1711_v28 = vmul.f32 %v1583_v13, %v1226_v15  ;;  %v1593_v19 = vadd.f32 %v2941_v12, %v1516_v7 }
 0x1ec   : > { %v1231_v25 = vpop.f32.mrf.mxu1 }
 0x1ed   : > { %v1232_v29 = vadd.f32 %v1231_v25, %v974_v24  ;;  %v978_v31 = vpop.f32.mrf.mxu0  ;;  %1775 = vst [vmem:[%s2951_s20 + $0x1a8] sm:$0xff] %v1711_v28  ;;  %v1712_v35 = vmul.f32 %v1584_v23, %v1230_v22 }
 0x1ee   : > { %v1235_v32 = vpop.f32.mrf.mxu1 }
 0x1ef   : > { %v1236_v36 = vadd.f32 %v1235_v32, %v978_v31  ;;  %v980_v39 = vpop.f32.mrf.mxu0  ;;  %1776 = vst [vmem:[%s2951_s20 + $0x1b0] sm:$0xff] %v1712_v35  ;;  %v1713_v42 = vmul.f32 %v1585_v30, %v1232_v29 }
 0x1f0   : > { %v1237_v40 = vpop.f32.mrf.mxu1 }
 0x1f1   : > { %v1238_v43 = vadd.f32 %v1237_v40, %v980_v39  ;;  %v984_v46 = vpop.f32.mrf.mxu0  ;;  %1777 = vst [vmem:[%s2951_s20 + $0x1b8] sm:$0xff] %v1713_v42  ;;  %v1714_v49 = vmul.f32 %v1586_v33, %v1236_v36 }
 0x1f2   : > { %v1241_v47 = vpop.f32.mrf.mxu1 }
 0x1f3   : > { %v1242_v50 = vadd.f32 %v1241_v47, %v984_v46  ;;  %v986_v52 = vpop.f32.mrf.mxu0  ;;  %1778 = vst [vmem:[%s2951_s20 + $0x1c0] sm:$0xff] %v1714_v49  ;;  %v1715_v56 = vmul.f32 %v1587_v41, %v1238_v43 }
 0x1f4   : > { %v1243_v53 = vpop.f32.mrf.mxu1 }
 0x1f5   : > { %v1244_v57 = vadd.f32 %v1243_v53, %v986_v52  ;;  %v990_v59 = vpop.f32.mrf.mxu0  ;;  %1779 = vst [vmem:[%s2951_s20 + $0x1c8] sm:$0xff] %v1715_v56  ;;  %v1716_v63 = vmul.f32 %v1588_v51, %v1242_v50 }
 0x1f6   : > { %v1247_v60 = vpop.f32.mrf.mxu1 }
 0x1f7   : > { %v1248_v0 = vadd.f32 %v1247_v60, %v990_v59  ;;  %v992_v2 = vpop.f32.mrf.mxu0  ;;  %1780 = vst [vmem:[%s2951_s20 + $0x1d0] sm:$0xff] %v1716_v63  ;;  %v1717_v5 = vmul.f32 %v1589_v58, %v1244_v57 }
 0x1f8   : > { %v1249_v3 = vpop.f32.mrf.mxu1 }
 0x1f9   : > { %v1250_v6 = vadd.f32 %v1249_v3, %v992_v2  ;;  %v996_v8 = vpop.f32.mrf.mxu0  ;;  %1781 = vst [vmem:[%s2951_s20 + $0x1d8] sm:$0xff] %v1717_v5  ;;  %v1718_v11 = vmul.f32 %v1590_v61, %v1248_v0 }
 0x1fa   : > { %v1253_v10 = vpop.f32.mrf.mxu1 }
 0x1fb   : > { %v1254_v13 = vadd.f32 %v1253_v10, %v996_v8  ;;  %v998_v15 = vpop.f32.mrf.mxu0  ;;  %1782 = vst [vmem:[%s2951_s20 + $0x1e0] sm:$0xff] %v1718_v11  ;;  %v1719_v17 = vmul.f32 %v1591_v4, %v1250_v6 }
 0x1fc   : > { %v1255_v16 = vpop.f32.mrf.mxu1 }
 0x1fd   : > { %v1256_v18 = vadd.f32 %v1255_v16, %v998_v15  ;;  %1783 = vst [vmem:[%s2951_s20 + $0x1e8] sm:$0xff] %v1719_v17  ;;  %v1720_v20 = vmul.f32 %v1592_v14, %v1254_v13 }
 0x1ff   : > { %1784 = vst [vmem:[%s2951_s20 + $0x1f0] sm:$0xff] %v1720_v20  ;;  %v1721_v9 = vmul.f32 %v1593_v19, %v1256_v18 }
 0x201   : > { %1785 = vst [vmem:[%s2951_s20 + $0x1f8] sm:$0xff] %v1721_v9 }
 0x202   : > { %2229 = shalt.err (!%p2226_p2)
}
 0x203   : > { %s2230_s9 = scalar_lea.hbm %s3139_s30, 8192  ;;  %s2234_s5 = scalar_lea.hbm %s3280_s13, 32768 }
 0x204   : > { %p2231_p5 = scmp.ne.s32.totalorder %s3139_s30, %s2230_s9  ;;  %p2235_p3 = scmp.lt.s32.totalorder %s3139_s30, %s3280_s13 }
 0x205   : > { %p2236_p8 = scmp.lt.s32.totalorder %s2234_s5, %s2230_s9 }
 0x206   : > { %p2232_p11 = pnand %p2231_p5, %p3281_p7 }
 0x207   : > { %p2237_p12 = por %p2236_p8, %p2235_p3 }
 0x208   : > { %p2233_p13 = pneg %p2232_p11 }
 0x20a   : > { %p2238_p9 = pnand %p2237_p12, %p2233_p13 }
 0x20c   : > { %2241 = shalt.err (!%p2238_p9)
}
 0x20d   : > { %s2378_s25 = smov 256   ;;  %s2379_s23 = smov 512  }
 0x20e   : > { %s2380_s1 = smov 16  }
 0x20f   : > { %1994 = dma.vmem_to_hbm [thread:$0]  (%p3281_p7), %s3141_s24, 8192, %s3139_s30, %s3147_s7, %s2378_s25, %s2379_s23, %s2380_s1  }
 0x210 PF: > { %p2011_p4 = scmp.ge.s32.totalorder %s2368_s28, 2  ;;  %s1818_s10 = sand.u32 1, %s2316_s15  }
 0x211   : > { %p3282_p10 = scmp.ne.s32.totalorder %s3271_s12, 0  ;;  %s1819_s18 = scalar_lea.sflag [#allocation4], %s1818_s10 }
 0x213   : > { %p2007_p6 = pnand %p2011_p4, %p3282_p10 }
 0x215   : > { %p2008_p0 = pneg %p2007_p6 }
 0x217   : > { %2311 = dma.done.wait (%p2008_p0), %s1819_s18, 8192  }
 0x218   : > { %2313 = vsyncadd (%p2008_p0), %s1819_s18, 4294959104  ;;  %s23_s28 = sadd.s32 1, %s2368_s28   ;;  %s3284_s8 = sld [smem:[#allocation13_spill]] }
 0x219   : > { %p3175_p1 = scmp.ge.s32.totalorder %s23_s28, 6   ;;  %s3285_s20 = sld [smem:[#allocation19_spill]] }
 0x21a   : > { %s3286_s24 = sld [smem:[#allocation14_spill]]  ;;  %s3290_s15 = smov %s2320_s16 }
 0x21b   : > { %s3287_s23 = sld [smem:[#allocation21_spill]]  ;;  %s3291_s16 = smov %s2324_s17 }
 0x21c   : > { %s3288_s12 = sld [smem:[#allocation17_spill]]  ;;  %s3292_s17 = smov %s2596_s6 }
 0x21d   : > { %s3289_s30 = sld [smem:[#allocation20_spill]]  ;;  %s3293_s18 = smov %s2332_s19 }
 0x21e   : > { %s3294_s19 = smov %s3284_s8  ;;  %s3295_s21 = smov %s2344_s22 }
 0x21f   : > { %s3298_s25 = smov %s2364_s27  ;;  %22 = sbr.rel (!%p3175_p1) target bundleno = 17 (0x11), region = 116 }
 0x220   : > { %s3296_s22 = smov %s3286_s24  ;;  %s3297_s24 = smov %s2360_s26 }
 0x222   : > { %s3299_s26 = smov %s3288_s12 }
 0x223   : > { %s3300_s27 = smov %s3289_s30 }
 0x224   :  { %1824 = vsyncpa [#allocation3], 1 }
 0x225   :  { %1826 = vsyncpa [#allocation3 + $0x1], 1 }
 0x226   :  { %1827 = vsyncpa [#allocation6], 1 }
 0x227   :  { %1829 = vsyncpa [#allocation6 + $0x1], 1 }
 0x228   :  { %1830 = vsyncpa [#allocation4], 1 }
 0x229   :  { %1832 = vsyncpa [#allocation4 + $0x1], 1 }

</bundles_post_ra>
